<compile_context>
chip_gen: v5e
topology: v5e:2x2
jax: 0.10.0
libtpu: 0.0.40
codegen_flags: <defaults>
</compile_context>

<pallas_src>
import functools
import math

import jax
import jax.numpy as jnp
from jax.experimental import pallas as pl
from jax.experimental.pallas import tpu as pltpu


def _layer_norm(v, gamma, beta, eps=1e-5):
    mu = jnp.mean(v, axis=-1, keepdims=True)
    var = jnp.mean((v - mu) ** 2, axis=-1, keepdims=True)
    return (v - mu) * jax.lax.rsqrt(var + eps) * gamma + beta


def encoder_layer_kernel(x_ref,
                         wq_ref, bq_ref, wkv_ref, bkv_ref, wo_ref, bo_ref,
                         w1_ref, b1_ref, w2_ref, b2_ref,
                         g1_ref, be1_ref, g2_ref, be2_ref,
                         o_ref,
                         kh_ref, vh_ref,
                         *, num_heads, seq_tile):
    f32 = jnp.float32
    bf16 = jnp.bfloat16

    S, D = x_ref.shape[1], x_ref.shape[2]
    H = num_heads
    d_k = D // H
    tq = seq_tile
    scale = 1.0 / math.sqrt(d_k)

    i = pl.program_id(1)
    row0 = pl.multiple_of(i * tq, tq)

    # ---- K/V projection: once per batch element.  The query-tile axis is
    # "arbitrary", so kh/vh persist in VMEM scratch across the inner grid axis
    # and are reused by the remaining n_qt - 1 query tiles.
    @pl.when(i == 0)
    def _compute_kv():
        x_full_bf = x_ref[0].astype(bf16)                               # (S, D)
        kv = jnp.dot(x_full_bf, wkv_ref[...],
                     preferred_element_type=f32) + bkv_ref[...]          # (S, 2D)
        k = kv[:, :D]
        v = kv[:, D:]
        # split_heads once; cached in bf16 (MXU operand dtype).
        kh_ref[...] = k.reshape(S, H, d_k).transpose(1, 0, 2).astype(bf16)
        vh_ref[...] = v.reshape(S, H, d_k).transpose(1, 0, 2).astype(bf16)

    # ---- per-query-tile work ------------------------------------------------
    x_q = x_ref[0, pl.ds(row0, tq), :]                  # (tq, D) f32 residual rows
    x_q_bf = x_q.astype(bf16)

    q = jnp.dot(x_q_bf, wq_ref[...], preferred_element_type=f32) + bq_ref[...]
    # 1/sqrt(d_k) folded into Q once (instead of scaling every (tq, S) score).
    qh = (q * scale).reshape(tq, H, d_k).transpose(1, 0, 2).astype(bf16)

    kh = kh_ref[...]                                    # (H, S, d_k) bf16 (cached)
    vh = vh_ref[...]

    # head-batched scaled dot-product attention (bf16 MXU, f32 accumulate)
    scores = jnp.einsum("hqd,hkd->hqk", qh, kh, preferred_element_type=f32)
    m = jnp.max(scores, axis=-1, keepdims=True)
    e = jnp.exp(scores - m)
    denom = jnp.sum(e, axis=-1, keepdims=True)

    # Unnormalized PV matmul; scale the (H, tq, d_k) context afterwards
    # (S/d_k fewer VPU multiplies than normalizing the (H, tq, S) probs).
    ctx = jnp.einsum("hqk,hkd->hqd", e.astype(bf16), vh,
                     preferred_element_type=f32)
    ctx = ctx * pl.reciprocal(denom, approx=True)
    attn = ctx.transpose(1, 0, 2).reshape(tq, D)        # combine_heads

    # output projection + residual + LayerNorm 1 (elementwise kept in f32)
    attn_out = jnp.dot(attn.astype(bf16), wo_ref[...],
                       preferred_element_type=f32) + bo_ref[...]
    x1 = _layer_norm(x_q + attn_out, g1_ref[...], be1_ref[...])

    # position-wise feed-forward + residual + LayerNorm 2
    h1 = jnp.maximum(
        jnp.dot(x1.astype(bf16), w1_ref[...], preferred_element_type=f32)
        + b1_ref[...], 0.0)
    ff = jnp.dot(h1.astype(bf16), w2_ref[...], preferred_element_type=f32) + b2_ref[...]
    x2 = _layer_norm(x1 + ff, g2_ref[...], be2_ref[...])

    o_ref[0] = x2.astype(o_ref.dtype)


def _const_index_map(ndim):
    def idx(b, i):
        return (0,) * ndim
    return idx


def _pad(n, m):
    return ((n + m - 1) // m) * m


def _vmem_estimate(S, D, H, d_k, d_ff, tq, weight_bytes):
    """Rough per-core VMEM footprint (bytes) for a given query tile."""
    pD = _pad(D, 128)
    pS = _pad(S, 128)
    pdk = _pad(d_k, 128)
    pdff = _pad(d_ff, 128)
    kv_scratch = 2 * H * S * pdk * 2          # kh/vh bf16 caches
    x_block = 2 * S * pD * 4                  # (1,S,D) f32, double-buffered
    out_block = 2 * tq * pD * 4               # output tile, double-buffered
    scores = 3 * H * tq * pS * 4              # scores + exp (+ slack)
    ffn = tq * pdff * 4
    misc = 8 * tq * pD * 4
    return 2 * weight_bytes + kv_scratch + x_block + out_block + scores + ffn + misc \
        + (2 << 20)


def _pick_seq_tile(S, D, H, d_k, d_ff, weight_bytes, vmem_budget):
    """Largest query tile <= 256 dividing S whose footprint fits the budget."""
    if S <= 256:
        return S
    cands = [t for t in (256, 128, 64, 32, 16, 8) if S % t == 0]
    if not cands:
        return S
    for tq in cands:
        if _vmem_estimate(S, D, H, d_k, d_ff, tq, weight_bytes) <= vmem_budget:
            return tq
    return cands[-1]


def encoder_layer(x, params, *, num_heads):
    """x: (B, S, D) float32.  params: dict of weights (see init_params)."""
    B, S, D = x.shape
    assert D % num_heads == 0, "d_model must be divisible by num_heads"
    d_k = D // num_heads
    d_ff = params["w1"].shape[1]
    bf16 = jnp.bfloat16

    # Fuse K/V weights into one operand (single MXU call over the full seq at
    # the first query tile); matmul weights travel as bf16, biases/LN as f32.
    wq = params["wq"].astype(bf16)
    bq = params["bq"]
    wkv = jnp.concatenate([params["wk"], params["wv"]], axis=1).astype(bf16)
    bkv = jnp.concatenate([params["bk"], params["bv"]], axis=1)
    wo = params["wo"].astype(bf16)
    w1 = params["w1"].astype(bf16)
    w2 = params["w2"].astype(bf16)

    weight_arrays = [wq, bq, wkv, bkv, wo, params["bo"], w1, params["b1"],
                     w2, params["b2"], params["g1"], params["be1"],
                     params["g2"], params["be2"]]
    weight_bytes = sum(int(a.size) * a.dtype.itemsize for a in weight_arrays)

    try:
        vmem_cap = int(pltpu.get_tpu_info().vmem_capacity_bytes)
    except Exception:
        vmem_cap = 64 * 1024 * 1024  # conservative (v7x per-TC)

    tq = _pick_seq_tile(S, D, num_heads, d_k, d_ff, weight_bytes,
                        int(0.7 * vmem_cap))
    n_qt = S // tq
    est_bytes = _vmem_estimate(S, D, num_heads, d_k, d_ff, tq, weight_bytes)
    vmem_limit = int(min(max(int(1.3 * est_bytes), 32 * 1024 * 1024),
                         int(0.9 * vmem_cap)))

    in_specs = [pl.BlockSpec((1, S, D), lambda b, i: (b, 0, 0))]
    in_specs += [pl.BlockSpec(a.shape, _const_index_map(a.ndim))
                 for a in weight_arrays]
    out_specs = pl.BlockSpec((1, tq, D), lambda b, i: (b, i, 0))

    # Cost estimate matches the cached-K/V structure (K/V projected once per
    # batch element, not once per query tile).
    flops = 2 * B * S * (4 * D * D + 2 * D * d_ff) \
        + 4 * B * num_heads * S * S * d_k
    transcendentals = B * num_heads * S * S
    bytes_accessed = int(2 * B * S * D * 4 + weight_bytes)

    kernel = functools.partial(encoder_layer_kernel,
                               num_heads=num_heads, seq_tile=tq)

    return pl.pallas_call(
        kernel,
        out_shape=jax.ShapeDtypeStruct((B, S, D), x.dtype),
        grid_spec=pltpu.PrefetchScalarGridSpec(
            num_scalar_prefetch=0,
            grid=(B, n_qt),
            in_specs=in_specs,
            out_specs=out_specs,
            scratch_shapes=[
                pltpu.VMEM((num_heads, S, d_k), jnp.bfloat16),   # kh cache
                pltpu.VMEM((num_heads, S, d_k), jnp.bfloat16),   # vh cache
            ],
        ),
        compiler_params=pltpu.CompilerParams(
            # batch axis parallel (megacore), query-tile axis arbitrary so the
            # K/V scratch cache is legal and carried across inner iterations.
            dimension_semantics=("parallel", "arbitrary"),
            vmem_limit_bytes=vmem_limit,
        ),
        cost_estimate=pl.CostEstimate(flops=int(flops),
                                      transcendentals=int(transcendentals),
                                      bytes_accessed=bytes_accessed),
    )(x, *weight_arrays)


def init_params(key, d_model, d_ff):
    """Deterministic synthetic init. Linear weights stored (in, out)."""
    ks = jax.random.split(key, 12)
    s = 1.0 / math.sqrt(d_model)
    sf = 1.0 / math.sqrt(d_ff)
    p = {
        "wq": jax.random.uniform(ks[0], (d_model, d_model), jnp.float32, -s, s),
        "bq": jax.random.uniform(ks[1], (1, d_model), jnp.float32, -s, s),
        "wk": jax.random.uniform(ks[2], (d_model, d_model), jnp.float32, -s, s),
        "bk": jax.random.uniform(ks[3], (1, d_model), jnp.float32, -s, s),
        "wv": jax.random.uniform(ks[4], (d_model, d_model), jnp.float32, -s, s),
        "bv": jax.random.uniform(ks[5], (1, d_model), jnp.float32, -s, s),
        "wo": jax.random.uniform(ks[6], (d_model, d_model), jnp.float32, -s, s),
        "bo": jax.random.uniform(ks[7], (1, d_model), jnp.float32, -s, s),
        "w1": jax.random.uniform(ks[8], (d_model, d_ff), jnp.float32, -s, s),
        "b1": jax.random.uniform(ks[9], (1, d_ff), jnp.float32, -s, s),
        "w2": jax.random.uniform(ks[10], (d_ff, d_model), jnp.float32, -sf, sf),
        "b2": jax.random.uniform(ks[11], (1, d_model), jnp.float32, -sf, sf),
        # LayerNorm default init (PyTorch): weight=1, bias=0
        "g1": jnp.ones((1, d_model), jnp.float32),
        "be1": jnp.zeros((1, d_model), jnp.float32),
        "g2": jnp.ones((1, d_model), jnp.float32),
        "be2": jnp.zeros((1, d_model), jnp.float32),
    }
    return p


def encoder_layer_ref(x, p, *, num_heads):
    """Pure-JAX f32 reference mirroring the PyTorch forward (eval mode)."""
    B, S, D = x.shape
    d_k = D // num_heads

    def lin(v, w, b):
        return v @ w + b

    q = lin(x, p["wq"], p["bq"]).reshape(B, S, num_heads, d_k).transpose(0, 2, 1, 3)
    k = lin(x, p["wk"], p["bk"]).reshape(B, S, num_heads, d_k).transpose(0, 2, 1, 3)
    v = lin(x, p["wv"], p["bv"]).reshape(B, S, num_heads, d_k).transpose(0, 2, 1, 3)
    scores = jnp.einsum("bhqd,bhkd->bhqk", q, k) / math.sqrt(d_k)
    probs = jax.nn.softmax(scores, axis=-1)
    attn = jnp.einsum("bhqk,bhkd->bhqd", probs, v)
    attn = attn.transpose(0, 2, 1, 3).reshape(B, S, D)
    attn_out = lin(attn, p["wo"], p["bo"])

    def ln(v, g, b, eps=1e-5):
        mu = jnp.mean(v, axis=-1, keepdims=True)
        var = jnp.mean((v - mu) ** 2, axis=-1, keepdims=True)
        return (v - mu) / jnp.sqrt(var + eps) * g + b

    x1 = ln(x + attn_out, p["g1"], p["be1"])
    ff = lin(jnp.maximum(lin(x1, p["w1"], p["b1"]), 0.0), p["w2"], p["b2"])
    return ln(x1 + ff, p["g2"], p["be2"])


if __name__ == "__main__":
    def run_case(B, S, D, H, d_ff, key):
        kx, kp = jax.random.split(key)
        x = jax.random.normal(kx, (B, S, D), jnp.float32)
        params = init_params(kp, D, d_ff)

        out = jax.block_until_ready(encoder_layer(x, params, num_heads=H))
        ref = encoder_layer_ref(x, params, num_heads=H)

        assert out.shape == (B, S, D)
        max_err = float(jnp.max(jnp.abs(out - ref)))
        rel = float(jnp.linalg.norm(out - ref) / jnp.linalg.norm(ref))
        # bf16 MXU operands + approx reciprocal vs f32 reference -> loosened tol.
        assert max_err < 1e-1 and rel < 3e-2, f"max_abs={max_err} rel_fro={rel}"

    key = jax.random.PRNGKey(0)
    k1, k2 = jax.random.split(key)
    # Small case (single query tile per batch element).
    run_case(B=2, S=8, D=32, H=4, d_ff=64, key=k1)
    # Modest case exercising the K/V cache reuse across query tiles
    # (tq=256 -> 2 inner-axis iterations per batch element).
    run_case(B=2, S=512, D=64, H=4, d_ff=128, key=k2)
    print("KERNEL_OK")
</pallas_src>

<mosaic_0001>
module attributes {stable_mosaic.version = 11 : i64} {
  func.func @encoder_layer_kernel(%arg0: i32, %arg1: i32, %arg2: memref<1x8x32xf32, #tpu.memory_space<vmem>>, %arg3: memref<32x32xbf16, #tpu.memory_space<vmem>>, %arg4: memref<1x32xf32, #tpu.memory_space<vmem>>, %arg5: memref<32x64xbf16, #tpu.memory_space<vmem>>, %arg6: memref<1x64xf32, #tpu.memory_space<vmem>>, %arg7: memref<32x32xbf16, #tpu.memory_space<vmem>>, %arg8: memref<1x32xf32, #tpu.memory_space<vmem>>, %arg9: memref<32x64xbf16, #tpu.memory_space<vmem>>, %arg10: memref<1x64xf32, #tpu.memory_space<vmem>>, %arg11: memref<64x32xbf16, #tpu.memory_space<vmem>>, %arg12: memref<1x32xf32, #tpu.memory_space<vmem>>, %arg13: memref<1x32xf32, #tpu.memory_space<vmem>>, %arg14: memref<1x32xf32, #tpu.memory_space<vmem>>, %arg15: memref<1x32xf32, #tpu.memory_space<vmem>>, %arg16: memref<1x32xf32, #tpu.memory_space<vmem>>, %arg17: memref<1x8x32xf32, #tpu.memory_space<vmem>>, %arg18: memref<4x8x8xbf16, #tpu.memory_space<vmem>>, %arg19: memref<4x8x8xbf16, #tpu.memory_space<vmem>>) attributes {dimension_semantics = [#tpu.dimension_semantics<parallel>, #tpu.dimension_semantics<arbitrary>], iteration_bounds = array<i64: 2, 1>, scalar_prefetch = 0 : i64, scratch_operands = 2 : i64, tpu.core_type = #tpu.core_type<tc>, window_params = [{transform_indices = @transform_0, window_bounds = array<i64: 1, 8, 32>}, {pipeline_mode = #tpu.pipeline_mode<synchronous>, transform_indices = @transform_1, window_bounds = array<i64: 32, 32>}, {pipeline_mode = #tpu.pipeline_mode<synchronous>, transform_indices = @transform_2, window_bounds = array<i64: 1, 32>}, {pipeline_mode = #tpu.pipeline_mode<synchronous>, transform_indices = @transform_3, window_bounds = array<i64: 32, 64>}, {pipeline_mode = #tpu.pipeline_mode<synchronous>, transform_indices = @transform_4, window_bounds = array<i64: 1, 64>}, {pipeline_mode = #tpu.pipeline_mode<synchronous>, transform_indices = @transform_5, window_bounds = array<i64: 32, 32>}, {pipeline_mode = #tpu.pipeline_mode<synchronous>, transform_indices = @transform_6, window_bounds = array<i64: 1, 32>}, {pipeline_mode = #tpu.pipeline_mode<synchronous>, transform_indices = @transform_7, window_bounds = array<i64: 32, 64>}, {pipeline_mode = #tpu.pipeline_mode<synchronous>, transform_indices = @transform_8, window_bounds = array<i64: 1, 64>}, {pipeline_mode = #tpu.pipeline_mode<synchronous>, transform_indices = @transform_9, window_bounds = array<i64: 64, 32>}, {pipeline_mode = #tpu.pipeline_mode<synchronous>, transform_indices = @transform_10, window_bounds = array<i64: 1, 32>}, {pipeline_mode = #tpu.pipeline_mode<synchronous>, transform_indices = @transform_11, window_bounds = array<i64: 1, 32>}, {pipeline_mode = #tpu.pipeline_mode<synchronous>, transform_indices = @transform_12, window_bounds = array<i64: 1, 32>}, {pipeline_mode = #tpu.pipeline_mode<synchronous>, transform_indices = @transform_13, window_bounds = array<i64: 1, 32>}, {pipeline_mode = #tpu.pipeline_mode<synchronous>, transform_indices = @transform_14, window_bounds = array<i64: 1, 32>}, {transform_indices = @transform_15, window_bounds = array<i64: 1, 8, 32>}]} {
    %c8_i32 = arith.constant 8 : i32
    %0 = arith.muli %arg1, %c8_i32 : i32
    %1 = tpu.assume_multiple %0, 8 : i32
    %c0_i32 = arith.constant 0 : i32
    %2 = arith.cmpi eq, %arg1, %c0_i32 : i32
    %3 = arith.extui %2 : i1 to i32
    %c0_i32_0 = arith.constant 0 : i32
    %4 = arith.cmpi ne, %3, %c0_i32_0 : i32
    scf.if %4 {
      %c0_54 = arith.constant 0 : index
      %c0_55 = arith.constant 0 : index
      %c0_56 = arith.constant 0 : index
      %109 = vector.load %arg2[%c0_54, %c0_55, %c0_56] : memref<1x8x32xf32, #tpu.memory_space<vmem>>, vector<1x8x32xf32>
      %110 = vector.shape_cast %109 : vector<1x8x32xf32> to vector<8x32xf32>
      %111 = arith.truncf %110 : vector<8x32xf32> to vector<8x32xbf16>
      %c0_57 = arith.constant 0 : index
      %c0_58 = arith.constant 0 : index
      %112 = vector.load %arg5[%c0_57, %c0_58] : memref<32x64xbf16, #tpu.memory_space<vmem>>, vector<32x64xbf16>
      %cst_59 = arith.constant dense<0.000000e+00> : vector<8x64xf32>
      %113 = tpu.matmul %111, %112, %cst_59 {dimension_numbers = #tpu.dot_dimension_numbers<[1], [0], [0], [1], [0, 0, 1, 1], [], []>} : vector<8x32xbf16>, vector<32x64xbf16>, vector<8x64xf32> -> vector<8x64xf32>
      %c0_60 = arith.constant 0 : index
      %c0_61 = arith.constant 0 : index
      %114 = vector.load %arg6[%c0_60, %c0_61] : memref<1x64xf32, #tpu.memory_space<vmem>>, vector<1x64xf32>
      %115 = vector.broadcast %114 : vector<1x64xf32> to vector<8x64xf32>
      %116 = arith.addf %113, %115 : vector<8x64xf32>
      %117 = vector.extract_strided_slice %116 {offsets = [0, 0], sizes = [8, 32], strides = [1, 1]} : vector<8x64xf32> to vector<8x32xf32>
      %118 = vector.extract_strided_slice %116 {offsets = [0, 32], sizes = [8, 32], strides = [1, 1]} : vector<8x64xf32> to vector<8x32xf32>
      %119 = vector.shape_cast %117 : vector<8x32xf32> to vector<8x4x8xf32>
      %120 = tpu.transpose %119, [1, 0, 2] : vector<8x4x8xf32> -> vector<4x8x8xf32>
      %121 = arith.truncf %120 : vector<4x8x8xf32> to vector<4x8x8xbf16>
      %c0_62 = arith.constant 0 : index
      %c0_63 = arith.constant 0 : index
      %c0_64 = arith.constant 0 : index
      %122 = vector.load %arg18[%c0_62, %c0_63, %c0_64] : memref<4x8x8xbf16, #tpu.memory_space<vmem>>, vector<4x8x8xbf16>
      tpu.vector_store %arg18[%c0_62, %c0_63, %c0_64], %121 {strides = array<i32>} : memref<4x8x8xbf16, #tpu.memory_space<vmem>>, vector<4x8x8xbf16>,
      %123 = vector.shape_cast %118 : vector<8x32xf32> to vector<8x4x8xf32>
      %124 = tpu.transpose %123, [1, 0, 2] : vector<8x4x8xf32> -> vector<4x8x8xf32>
      %125 = arith.truncf %124 : vector<4x8x8xf32> to vector<4x8x8xbf16>
      %c0_65 = arith.constant 0 : index
      %c0_66 = arith.constant 0 : index
      %c0_67 = arith.constant 0 : index
      %126 = vector.load %arg19[%c0_65, %c0_66, %c0_67] : memref<4x8x8xbf16, #tpu.memory_space<vmem>>, vector<4x8x8xbf16>
      tpu.vector_store %arg19[%c0_65, %c0_66, %c0_67], %125 {strides = array<i32>} : memref<4x8x8xbf16, #tpu.memory_space<vmem>>, vector<4x8x8xbf16>,
    } else {
    }
    %c0 = arith.constant 0 : index
    %5 = arith.index_cast %1 : i32 to index
    %c0_1 = arith.constant 0 : index
    %6 = vector.load %arg2[%c0, %5, %c0_1] : memref<1x8x32xf32, #tpu.memory_space<vmem>>, vector<1x8x32xf32>
    %7 = vector.shape_cast %6 : vector<1x8x32xf32> to vector<8x32xf32>
    %8 = arith.truncf %7 : vector<8x32xf32> to vector<8x32xbf16>
    %c0_2 = arith.constant 0 : index
    %c0_3 = arith.constant 0 : index
    %9 = vector.load %arg3[%c0_2, %c0_3] : memref<32x32xbf16, #tpu.memory_space<vmem>>, vector<32x32xbf16>
    %cst = arith.constant dense<0.000000e+00> : vector<8x32xf32>
    %10 = tpu.matmul %8, %9, %cst {dimension_numbers = #tpu.dot_dimension_numbers<[1], [0], [0], [1], [0, 0, 1, 1], [], []>} : vector<8x32xbf16>, vector<32x32xbf16>, vector<8x32xf32> -> vector<8x32xf32>
    %c0_4 = arith.constant 0 : index
    %c0_5 = arith.constant 0 : index
    %11 = vector.load %arg4[%c0_4, %c0_5] : memref<1x32xf32, #tpu.memory_space<vmem>>, vector<1x32xf32>
    %12 = vector.broadcast %11 : vector<1x32xf32> to vector<8x32xf32>
    %13 = arith.addf %10, %12 : vector<8x32xf32>
    %cst_6 = arith.constant 0.353553385 : f32
    %14 = vector.broadcast %cst_6 : f32 to vector<8x32xf32>
    %15 = arith.mulf %13, %14 : vector<8x32xf32>
    %16 = vector.shape_cast %15 : vector<8x32xf32> to vector<8x4x8xf32>
    %17 = tpu.transpose %16, [1, 0, 2] : vector<8x4x8xf32> -> vector<4x8x8xf32>
    %18 = arith.truncf %17 : vector<4x8x8xf32> to vector<4x8x8xbf16>
    %c0_7 = arith.constant 0 : index
    %c0_8 = arith.constant 0 : index
    %c0_9 = arith.constant 0 : index
    %19 = vector.load %arg18[%c0_7, %c0_8, %c0_9] : memref<4x8x8xbf16, #tpu.memory_space<vmem>>, vector<4x8x8xbf16>
    %c0_10 = arith.constant 0 : index
    %c0_11 = arith.constant 0 : index
    %c0_12 = arith.constant 0 : index
    %20 = vector.load %arg19[%c0_10, %c0_11, %c0_12] : memref<4x8x8xbf16, #tpu.memory_space<vmem>>, vector<4x8x8xbf16>
    "tpu.trace_start"() <{level = 10 : i32, message = "hqd,hkd->hqk"}> : () -> ()
    %cst_13 = arith.constant dense<0.000000e+00> : vector<4x8x8xf32>
    %21 = tpu.matmul %18, %19, %cst_13 {dimension_numbers = #tpu.dot_dimension_numbers<[2], [2], [1], [1], [0, 0, 0, 1, 1, 1], [0], [0]>} : vector<4x8x8xbf16>, vector<4x8x8xbf16>, vector<4x8x8xf32> -> vector<4x8x8xf32>
    "tpu.trace_stop"() : () -> ()
    %cst_14 = arith.constant dense<0xFF800000> : vector<4x8xf32>
    %22 = vector.multi_reduction <maximumf>, %21, %cst_14 [2] : vector<4x8x8xf32> to vector<4x8xf32>
    %23 = vector.shape_cast %22 : vector<4x8xf32> to vector<4x8x1xf32>
    %24 = vector.broadcast %23 : vector<4x8x1xf32> to vector<4x8x8xf32>
    %25 = arith.subf %21, %24 : vector<4x8x8xf32>
    %26 = math.exp %25 : vector<4x8x8xf32>
    %cst_15 = arith.constant dense<0.000000e+00> : vector<4x8xf32>
    %27 = vector.multi_reduction <add>, %26, %cst_15 [2] : vector<4x8x8xf32> to vector<4x8xf32>
    %28 = vector.shape_cast %27 : vector<4x8xf32> to vector<4x8x1xf32>
    %29 = arith.truncf %26 : vector<4x8x8xf32> to vector<4x8x8xbf16>
    "tpu.trace_start"() <{level = 10 : i32, message = "hqk,hkd->hqd"}> : () -> ()
    %cst_16 = arith.constant dense<0.000000e+00> : vector<4x8x8xf32>
    %30 = tpu.matmul %29, %20, %cst_16 {dimension_numbers = #tpu.dot_dimension_numbers<[2], [1], [1], [2], [0, 0, 0, 1, 1, 2], [0], [0]>} : vector<4x8x8xbf16>, vector<4x8x8xbf16>, vector<4x8x8xf32> -> vector<4x8x8xf32>
    "tpu.trace_stop"() : () -> ()
    %31 = tpu.reciprocal %28 {approx = true} : vector<4x8x1xf32> -> vector<4x8x1xf32>
    %32 = vector.broadcast %31 : vector<4x8x1xf32> to vector<4x8x8xf32>
    %33 = arith.mulf %30, %32 : vector<4x8x8xf32>
    %34 = tpu.transpose %33, [1, 0, 2] : vector<4x8x8xf32> -> vector<8x4x8xf32>
    %35 = vector.shape_cast %34 : vector<8x4x8xf32> to vector<8x32xf32>
    %36 = arith.truncf %35 : vector<8x32xf32> to vector<8x32xbf16>
    %c0_17 = arith.constant 0 : index
    %c0_18 = arith.constant 0 : index
    %37 = vector.load %arg7[%c0_17, %c0_18] : memref<32x32xbf16, #tpu.memory_space<vmem>>, vector<32x32xbf16>
    %cst_19 = arith.constant dense<0.000000e+00> : vector<8x32xf32>
    %38 = tpu.matmul %36, %37, %cst_19 {dimension_numbers = #tpu.dot_dimension_numbers<[1], [0], [0], [1], [0, 0, 1, 1], [], []>} : vector<8x32xbf16>, vector<32x32xbf16>, vector<8x32xf32> -> vector<8x32xf32>
    %c0_20 = arith.constant 0 : index
    %c0_21 = arith.constant 0 : index
    %39 = vector.load %arg8[%c0_20, %c0_21] : memref<1x32xf32, #tpu.memory_space<vmem>>, vector<1x32xf32>
    %40 = vector.broadcast %39 : vector<1x32xf32> to vector<8x32xf32>
    %41 = arith.addf %38, %40 : vector<8x32xf32>
    %42 = arith.addf %7, %41 : vector<8x32xf32>
    %c0_22 = arith.constant 0 : index
    %c0_23 = arith.constant 0 : index
    %43 = vector.load %arg13[%c0_22, %c0_23] : memref<1x32xf32, #tpu.memory_space<vmem>>, vector<1x32xf32>
    %c0_24 = arith.constant 0 : index
    %c0_25 = arith.constant 0 : index
    %44 = vector.load %arg14[%c0_24, %c0_25] : memref<1x32xf32, #tpu.memory_space<vmem>>, vector<1x32xf32>
    %cst_26 = arith.constant dense<0.000000e+00> : vector<8xf32>
    %45 = vector.multi_reduction <add>, %42, %cst_26 [1] : vector<8x32xf32> to vector<8xf32>
    %46 = vector.shape_cast %45 : vector<8xf32> to vector<8x1xf32>
    %cst_27 = arith.constant 3.200000e+01 : f32
    %47 = vector.broadcast %cst_27 : f32 to vector<8x1xf32>
    %48 = arith.divf %46, %47 : vector<8x1xf32>
    %49 = vector.broadcast %48 : vector<8x1xf32> to vector<8x32xf32>
    %50 = arith.subf %42, %49 : vector<8x32xf32>
    %51 = arith.mulf %50, %50 : vector<8x32xf32>
    %cst_28 = arith.constant dense<0.000000e+00> : vector<8xf32>
    %52 = vector.multi_reduction <add>, %51, %cst_28 [1] : vector<8x32xf32> to vector<8xf32>
    %53 = vector.shape_cast %52 : vector<8xf32> to vector<8x1xf32>
    %cst_29 = arith.constant 3.200000e+01 : f32
    %54 = vector.broadcast %cst_29 : f32 to vector<8x1xf32>
    %55 = arith.divf %53, %54 : vector<8x1xf32>
    %56 = vector.broadcast %48 : vector<8x1xf32> to vector<8x32xf32>
    %57 = arith.subf %42, %56 : vector<8x32xf32>
    %cst_30 = arith.constant 9.99999974E-6 : f32
    %58 = vector.broadcast %cst_30 : f32 to vector<8x1xf32>
    %59 = arith.addf %55, %58 : vector<8x1xf32>
    %60 = math.rsqrt %59 : vector<8x1xf32>
    %61 = vector.broadcast %60 : vector<8x1xf32> to vector<8x32xf32>
    %62 = arith.mulf %57, %61 : vector<8x32xf32>
    %63 = vector.broadcast %43 : vector<1x32xf32> to vector<8x32xf32>
    %64 = arith.mulf %62, %63 : vector<8x32xf32>
    %65 = vector.broadcast %44 : vector<1x32xf32> to vector<8x32xf32>
    %66 = arith.addf %64, %65 : vector<8x32xf32>
    %67 = arith.truncf %66 : vector<8x32xf32> to vector<8x32xbf16>
    %c0_31 = arith.constant 0 : index
    %c0_32 = arith.constant 0 : index
    %68 = vector.load %arg9[%c0_31, %c0_32] : memref<32x64xbf16, #tpu.memory_space<vmem>>, vector<32x64xbf16>
    %cst_33 = arith.constant dense<0.000000e+00> : vector<8x64xf32>
    %69 = tpu.matmul %67, %68, %cst_33 {dimension_numbers = #tpu.dot_dimension_numbers<[1], [0], [0], [1], [0, 0, 1, 1], [], []>} : vector<8x32xbf16>, vector<32x64xbf16>, vector<8x64xf32> -> vector<8x64xf32>
    %c0_34 = arith.constant 0 : index
    %c0_35 = arith.constant 0 : index
    %70 = vector.load %arg10[%c0_34, %c0_35] : memref<1x64xf32, #tpu.memory_space<vmem>>, vector<1x64xf32>
    %71 = vector.broadcast %70 : vector<1x64xf32> to vector<8x64xf32>
    %72 = arith.addf %69, %71 : vector<8x64xf32>
    %cst_36 = arith.constant 0.000000e+00 : f32
    %73 = vector.broadcast %cst_36 : f32 to vector<8x64xf32>
    %74 = arith.maximumf %72, %73 : vector<8x64xf32>
    %75 = arith.truncf %74 : vector<8x64xf32> to vector<8x64xbf16>
    %c0_37 = arith.constant 0 : index
    %c0_38 = arith.constant 0 : index
    %76 = vector.load %arg11[%c0_37, %c0_38] : memref<64x32xbf16, #tpu.memory_space<vmem>>, vector<64x32xbf16>
    %cst_39 = arith.constant dense<0.000000e+00> : vector<8x32xf32>
    %77 = tpu.matmul %75, %76, %cst_39 {dimension_numbers = #tpu.dot_dimension_numbers<[1], [0], [0], [1], [0, 0, 1, 1], [], []>} : vector<8x64xbf16>, vector<64x32xbf16>, vector<8x32xf32> -> vector<8x32xf32>
    %c0_40 = arith.constant 0 : index
    %c0_41 = arith.constant 0 : index
    %78 = vector.load %arg12[%c0_40, %c0_41] : memref<1x32xf32, #tpu.memory_space<vmem>>, vector<1x32xf32>
    %79 = vector.broadcast %78 : vector<1x32xf32> to vector<8x32xf32>
    %80 = arith.addf %77, %79 : vector<8x32xf32>
    %81 = arith.addf %66, %80 : vector<8x32xf32>
    %c0_42 = arith.constant 0 : index
    %c0_43 = arith.constant 0 : index
    %82 = vector.load %arg15[%c0_42, %c0_43] : memref<1x32xf32, #tpu.memory_space<vmem>>, vector<1x32xf32>
    %c0_44 = arith.constant 0 : index
    %c0_45 = arith.constant 0 : index
    %83 = vector.load %arg16[%c0_44, %c0_45] : memref<1x32xf32, #tpu.memory_space<vmem>>, vector<1x32xf32>
    %cst_46 = arith.constant dense<0.000000e+00> : vector<8xf32>
    %84 = vector.multi_reduction <add>, %81, %cst_46 [1] : vector<8x32xf32> to vector<8xf32>
    %85 = vector.shape_cast %84 : vector<8xf32> to vector<8x1xf32>
    %cst_47 = arith.constant 3.200000e+01 : f32
    %86 = vector.broadcast %cst_47 : f32 to vector<8x1xf32>
    %87 = arith.divf %85, %86 : vector<8x1xf32>
    %88 = vector.broadcast %87 : vector<8x1xf32> to vector<8x32xf32>
    %89 = arith.subf %81, %88 : vector<8x32xf32>
    %90 = arith.mulf %89, %89 : vector<8x32xf32>
    %cst_48 = arith.constant dense<0.000000e+00> : vector<8xf32>
    %91 = vector.multi_reduction <add>, %90, %cst_48 [1] : vector<8x32xf32> to vector<8xf32>
    %92 = vector.shape_cast %91 : vector<8xf32> to vector<8x1xf32>
    %cst_49 = arith.constant 3.200000e+01 : f32
    %93 = vector.broadcast %cst_49 : f32 to vector<8x1xf32>
    %94 = arith.divf %92, %93 : vector<8x1xf32>
    %95 = vector.broadcast %87 : vector<8x1xf32> to vector<8x32xf32>
    %96 = arith.subf %81, %95 : vector<8x32xf32>
    %cst_50 = arith.constant 9.99999974E-6 : f32
    %97 = vector.broadcast %cst_50 : f32 to vector<8x1xf32>
    %98 = arith.addf %94, %97 : vector<8x1xf32>
    %99 = math.rsqrt %98 : vector<8x1xf32>
    %100 = vector.broadcast %99 : vector<8x1xf32> to vector<8x32xf32>
    %101 = arith.mulf %96, %100 : vector<8x32xf32>
    %102 = vector.broadcast %82 : vector<1x32xf32> to vector<8x32xf32>
    %103 = arith.mulf %101, %102 : vector<8x32xf32>
    %104 = vector.broadcast %83 : vector<1x32xf32> to vector<8x32xf32>
    %105 = arith.addf %103, %104 : vector<8x32xf32>
    %c0_51 = arith.constant 0 : index
    %c0_52 = arith.constant 0 : index
    %c0_53 = arith.constant 0 : index
    %106 = vector.load %arg17[%c0_51, %c0_52, %c0_53] : memref<1x8x32xf32, #tpu.memory_space<vmem>>, vector<1x8x32xf32>
    %107 = vector.shape_cast %106 : vector<1x8x32xf32> to vector<8x32xf32>
    %108 = vector.shape_cast %105 : vector<8x32xf32> to vector<1x8x32xf32>
    tpu.vector_store %arg17[%c0_51, %c0_52, %c0_53], %108 {strides = array<i32>} : memref<1x8x32xf32, #tpu.memory_space<vmem>>, vector<1x8x32xf32>,
    return
  }
  func.func @transform_0(%arg0: i32, %arg1: i32) -> (i32, i32, i32) {
    %c0_i32 = arith.constant 0 : i32
    %c0_i32_0 = arith.constant 0 : i32
    %c0_i32_1 = arith.constant 0 : i32
    return %arg0, %c0_i32, %c0_i32_0 : i32, i32, i32
  }
  func.func @transform_1(%arg0: i32, %arg1: i32) -> (i32, i32) {
    %c0_i32 = arith.constant 0 : i32
    %c0_i32_0 = arith.constant 0 : i32
    %c0_i32_1 = arith.constant 0 : i32
    return %c0_i32, %c0_i32_0 : i32, i32
  }
  func.func @transform_2(%arg0: i32, %arg1: i32) -> (i32, i32) {
    %c0_i32 = arith.constant 0 : i32
    %c0_i32_0 = arith.constant 0 : i32
    %c0_i32_1 = arith.constant 0 : i32
    return %c0_i32, %c0_i32_0 : i32, i32
  }
  func.func @transform_3(%arg0: i32, %arg1: i32) -> (i32, i32) {
    %c0_i32 = arith.constant 0 : i32
    %c0_i32_0 = arith.constant 0 : i32
    %c0_i32_1 = arith.constant 0 : i32
    return %c0_i32, %c0_i32_0 : i32, i32
  }
  func.func @transform_4(%arg0: i32, %arg1: i32) -> (i32, i32) {
    %c0_i32 = arith.constant 0 : i32
    %c0_i32_0 = arith.constant 0 : i32
    %c0_i32_1 = arith.constant 0 : i32
    return %c0_i32, %c0_i32_0 : i32, i32
  }
  func.func @transform_5(%arg0: i32, %arg1: i32) -> (i32, i32) {
    %c0_i32 = arith.constant 0 : i32
    %c0_i32_0 = arith.constant 0 : i32
    %c0_i32_1 = arith.constant 0 : i32
    return %c0_i32, %c0_i32_0 : i32, i32
  }
  func.func @transform_6(%arg0: i32, %arg1: i32) -> (i32, i32) {
    %c0_i32 = arith.constant 0 : i32
    %c0_i32_0 = arith.constant 0 : i32
    %c0_i32_1 = arith.constant 0 : i32
    return %c0_i32, %c0_i32_0 : i32, i32
  }
  func.func @transform_7(%arg0: i32, %arg1: i32) -> (i32, i32) {
    %c0_i32 = arith.constant 0 : i32
    %c0_i32_0 = arith.constant 0 : i32
    %c0_i32_1 = arith.constant 0 : i32
    return %c0_i32, %c0_i32_0 : i32, i32
  }
  func.func @transform_8(%arg0: i32, %arg1: i32) -> (i32, i32) {
    %c0_i32 = arith.constant 0 : i32
    %c0_i32_0 = arith.constant 0 : i32
    %c0_i32_1 = arith.constant 0 : i32
    return %c0_i32, %c0_i32_0 : i32, i32
  }
  func.func @transform_9(%arg0: i32, %arg1: i32) -> (i32, i32) {
    %c0_i32 = arith.constant 0 : i32
    %c0_i32_0 = arith.constant 0 : i32
    %c0_i32_1 = arith.constant 0 : i32
    return %c0_i32, %c0_i32_0 : i32, i32
  }
  func.func @transform_10(%arg0: i32, %arg1: i32) -> (i32, i32) {
    %c0_i32 = arith.constant 0 : i32
    %c0_i32_0 = arith.constant 0 : i32
    %c0_i32_1 = arith.constant 0 : i32
    return %c0_i32, %c0_i32_0 : i32, i32
  }
  func.func @transform_11(%arg0: i32, %arg1: i32) -> (i32, i32) {
    %c0_i32 = arith.constant 0 : i32
    %c0_i32_0 = arith.constant 0 : i32
    %c0_i32_1 = arith.constant 0 : i32
    return %c0_i32, %c0_i32_0 : i32, i32
  }
  func.func @transform_12(%arg0: i32, %arg1: i32) -> (i32, i32) {
    %c0_i32 = arith.constant 0 : i32
    %c0_i32_0 = arith.constant 0 : i32
    %c0_i32_1 = arith.constant 0 : i32
    return %c0_i32, %c0_i32_0 : i32, i32
  }
  func.func @transform_13(%arg0: i32, %arg1: i32) -> (i32, i32) {
    %c0_i32 = arith.constant 0 : i32
    %c0_i32_0 = arith.constant 0 : i32
    %c0_i32_1 = arith.constant 0 : i32
    return %c0_i32, %c0_i32_0 : i32, i32
  }
  func.func @transform_14(%arg0: i32, %arg1: i32) -> (i32, i32) {
    %c0_i32 = arith.constant 0 : i32
    %c0_i32_0 = arith.constant 0 : i32
    %c0_i32_1 = arith.constant 0 : i32
    return %c0_i32, %c0_i32_0 : i32, i32
  }
  func.func @transform_15(%arg0: i32, %arg1: i32) -> (i32, i32, i32) {
    %c0_i32 = arith.constant 0 : i32
    %c0_i32_0 = arith.constant 0 : i32
    return %arg0, %arg1, %c0_i32 : i32, i32, i32
  }
}

</mosaic_0001>

<bundles_post_ra>
// kernel: tpu_custom_call.1
= control target key start
LH: loop header
LB: loop body
LE: loop exit
PB: predicated region body
PF: predicated region fallthrough
CT: control target
= control target key end

     0   :  { %s2500_s0 = inlined_call_operand.vmem [shape: f32[2,8,32], index: 0, kind: input, shape index: {}]   ;;  %s2501_s1 = inlined_call_operand.vmem [shape: bf16[32,32], index: 1, kind: input, shape index: {}]   ;;  %s2502_s2 = inlined_call_operand.vmem [shape: f32[1,32], index: 2, kind: input, shape index: {}]   ;;  %s2503_s3 = inlined_call_operand.vmem [shape: bf16[32,64], index: 3, kind: input, shape index: {}]   ;;  %s2504_s4 = inlined_call_operand.vmem [shape: f32[1,64], index: 4, kind: input, shape index: {}]   ;;  %s2505_s5 = inlined_call_operand.hbm [shape: bf16[32,32], index: 5, kind: input, shape index: {}]   ;;  %s2506_s6 = inlined_call_operand.vmem [shape: f32[1,32], index: 6, kind: input, shape index: {}]   ;;  %s2507_s7 = inlined_call_operand.hbm [shape: bf16[32,64], index: 7, kind: input, shape index: {}]   ;;  %s2508_s8 = inlined_call_operand.vmem [shape: f32[1,64], index: 8, kind: input, shape index: {}]   ;;  %s2509_s9 = inlined_call_operand.vmem [shape: bf16[64,32], index: 9, kind: input, shape index: {}]   ;;  %s2510_s10 = inlined_call_operand.vmem [shape: f32[1,32], index: 10, kind: input, shape index: {}]   ;;  %s2511_s11 = inlined_call_operand.vmem [shape: f32[1,32], index: 11, kind: input, shape index: {}]   ;;  %s2512_s12 = inlined_call_operand.vmem [shape: f32[1,32], index: 12, kind: input, shape index: {}]   ;;  %s2513_s13 = inlined_call_operand.vmem [shape: f32[1,32], index: 13, kind: input, shape index: {}]   ;;  %s2514_s14 = inlined_call_operand.vmem [shape: f32[1,32], index: 14, kind: input, shape index: {}]   ;;  %s2515_s15 = inlined_call_operand.hbm [shape: f32[2,8,32], index: 15, kind: output, shape index: {}]  }
   0x1   :  { %2523 = sst [smem:[#allocation20_spill]] %s2514_s14 }
   0x2   :  { %20 = vsyncpa [#allocation5], 0 }
   0x3   :  { %21 = vsyncpa [#allocation8], 0 }
   0x4   :  { %22 = vsyncpa [#allocation6], 0 }
   0x5   :  { %24 = vsyncpa [#allocation6 + $0x1], 0  ;;  %s2117_s18 = smov 0   ;;  %s2119_s19 = smov 0  }
   0x6   :  { %s2121_s20 = smov 0   ;;  %s2123_s21 = smov 0  }
   0x7   :  { %s2125_s22 = smov 0   ;;  %s2127_s23 = smov 0  }
   0x8 LB: > { %2524 = sst [smem:[#allocation13_spill]] %s2001_s18  ;;  %s1658_s24 = sadd.s32 4294967295, %s2021_s23   ;;  %s2021_s23 = sphi %s2127_s23, %s30_s23   ;;  %s2017_s22 = sphi %s2125_s22, %s2542_s22   ;;  %s2013_s21 = sphi %s2123_s21, %s2541_s21   ;;  %s2009_s20 = sphi %s2121_s20, %s2540_s20   ;;  %s2005_s19 = sphi %s2119_s19, %s2544_s19   ;;  %s2001_s18 = sphi %s2117_s18, %s2543_s18  }
   0x9   : > { %2525 = sst [smem:[#allocation14_spill]] %s2009_s20  ;;  %s1659_s25 = sadd.s32 4294967294, %s2021_s23  }
   0xa   : > { %2526 = sst [smem:[#allocation15_spill]] %s2017_s22  ;;  %s42_s26 = sadd.s32 1, %s2017_s22 }
   0xb   : > { %2527 = sst [smem:[#allocation16_spill]] %s2021_s23  ;;  %s371_s27 = sadd.s32 1, %s2009_s20 }
   0xc   : > { %p44_p0 = scmp.ge.s32.totalorder %s42_s26, 2  ;;  %p381_p1 = scmp.ne.s32.totalorder %s2009_s20, %s2005_s19 }
   0xd   : > { %p382_p2 = scmp.eq.s32.totalorder %s1658_s24, 1  ;;  %p387_p3 = scmp.ne.s32.totalorder %s2005_s19, %s2001_s18 }
   0xe   : > { %s2546_s26 = smov (%p44_p0, %s42_s26), 0  ;;  %p388_p5 = scmp.eq.s32.totalorder %s1659_s25, 1 }
   0xf   : > { %2528 = sst [smem:[#allocation17_spill]] %s2546_s26  ;;  %p2157_p4 = por %p382_p2, %p381_p1 }
  0x10   : > { %s366_s29 = ssub.s32 %s2017_s22, %s2546_s26  ;;  %p1660_p6 = scmp.ge.s32.totalorder %s2021_s23, 1 }
  0x11   : > { %p369_p7 = scmp.eq.s32.totalorder %s366_s29, 0  ;;  %p2164_p8 = por %p388_p5, %p387_p3 }
  0x12   : > { %p395_p9 = scmp.lt.s32.totalorder %s2021_s23, 3  ;;  %p2176_p11 = scmp.eq.s32.totalorder %s1658_s24, 0 }
  0x13   : > { %s2530_s30 = scalar_select %p2164_p8, 1, 0 }
  0x14   : > { %s2170_s16 = scalar_select %p369_p7, %s2009_s20, %s371_s27  }
  0x15   : > { %2531 = sst [smem:[#allocation18_spill]] %s2530_s30  ;;  %p2172_p10 = pnand %p1660_p6, %p395_p9 }
  0x16   : > { %2532 = sst [smem:[#allocation19_spill]] %s2170_s16  ;;  %s418_s29 = sshll.u32 %s2505_s5, 4  ;;  %s419_s29 = int_to_ptr.hbm [resolvable:$true] %s418_s29 }
  0x17   : > { %p1756_p12 = pneg %p2172_p10  ;;  %s2023_s22 = smov [#allocation4]  }
  0x18   : > { %s420_s27 = sshll.u32 %s2023_s22, 4  ;;  %s435_s24 = sshll.u32 %s2507_s7, 4  ;;  %s421_s27 = int_to_ptr.vmem [resolvable:$true] %s420_s27  ;;  %s436_s24 = int_to_ptr.hbm [resolvable:$true] %s435_s24 }
  0x19   : > { %p1757_p13 = pnand %p2176_p11, %p1756_p12  ;;  %s2024_s30 = smov 64  }
  0x1a   : > { %s2025_s23 = smov 4   ;;  %s2026_s14 = smov [#allocation7]  }
  0x1b   : > { %1759 = dma.hbm_to_vmem [thread:$0]  (!%p1757_p13), %s419_s29, 256, %s421_s27, [#allocation5], %s2024_s30, %s2024_s30, %s2025_s23  }
  0x1c   : > { %s437_s26 = sshll.u32 %s2026_s14, 4  ;;  %481 = sbr.rel (%p2172_p10) target bundleno = 1829 (0x725), region = 80  ;;  %s438_s26 = int_to_ptr.vmem [resolvable:$true] %s437_s26 }
  0x1d   : > { %1762 = dma.hbm_to_vmem [thread:$0]  (!%p1757_p13), %s436_s24, 256, %s438_s26, [#allocation8], %s2024_s30, %s2024_s30, %s2025_s23  }
  0x21   : > { %1988 = dma.done.wait (%p2176_p11), [#allocation5], 256  }
  0x22   : > { %1990 = vsyncadd (%p2176_p11), [#allocation5], 4294967040 }
  0x23   : > { %1992 = dma.done.wait (%p2176_p11), [#allocation8], 256  }
  0x24   : > { %1994 = vsyncadd (%p2176_p11), [#allocation8], 4294967040  ;;  %p534_p0 = scmp.lt.s32.totalorder %s2013_s21, 1  ;;  %v1735_v0 = vld [vmem:[%s2503_s3 + $0x8] sm:$0xff]  ;;  %v1734_v2 = vld [vmem:[%s2503_s3] sm:$0xff]  ;;  %vm566_vm0 = vcmask 261120  }
  0x25   : > { %v1737_v1 = vld [vmem:[%s2501_s1 + $0x8] sm:$0xff]  ;;  %v1736_v3 = vld [vmem:[%s2501_s1] sm:$0xff]  ;;  %576 = vmatpush.bf16.msra.mxu0 %v1735_v0  ;;  %s2028_s16 = smov 120   ;;  %s2029_s17 = smov 112   ;;  %v2030_v16 = vmov 1983009808  }
  0x26   : > { %s535_s14 = scalar_select %p534_p0, %s2013_s21, 1  ;;  %876 = vmatpush.bf16.msra.mxu1 %v1737_v1  ;;  %v1844_v6 = vld [vmem:[%s2504_s4] ss:$0 sm:$0xff]  ;;  %v599_v17 = vunpack.c.l.s4 %v2030_v16  ;;  %vm594_vm1 = vcmask 1047556   ;;  %v2032_v32 = vmov 1934713408  }
  0x27   : > { %v1845_v7 = vld [vmem:[%s2502_s2] ss:$0 sm:$0xff]  ;;  %s2031_s25 = smov 96   ;;  %v623_v33 = vunpack.c.l.s4 %v2032_v32  ;;  %vm708_vm2 = vcmask 60416   ;;  %vm1017_vm3 = vcmask 64512   ;;  %vm1137_vm4 = vcmask 1043456  }
  0x28   : > { %s1668_s20 = sshll.u32 %s535_s14, 3  ;;  %v2229_v25 = vunpack.c.0.s8 %v599_v17  ;;  %s2033_s29 = smov 24   ;;  %vm1342_vm5 = vcmask 130048   ;;  %vm1344_vm6 = vcmask 195584   ;;  %vm1498_vm11 = vcmask 523264  }
  0x29   : > { %s537_s30 = scalar_lea.vmem %s2500_s0, %s1668_s20  ;;  %577 = vmatpush.bf16.msra.mxu0 %v1734_v2  ;;  %v2240_v46 = vunpack.c.0.s8 %v623_v33  ;;  %s2034_s27 = smov 16  }
  0x2a   : > { %v2217_v4 = vld [vmem:[%s537_s30] sm:$0xff]  ;;  %877 = vmatpush.bf16.msra.mxu1 %v1736_v3  ;;  %s2027_s30 = smov 104   ;;  %s2035_s18 = smov 8  }
  0x2b   : > { %v545_v5 = vpack.c.bf16 %v2217_v4, %v2217_v4  ;;  %s531_s23 = sand.u32 1, %s2005_s19   ;;  %s2535_s14 = sld [smem:[#allocation20_spill]] }
  0x2d   : > { %1677 = vmatmul.msk.bf16.vlgmr.msra.gmra.mxu0 %vm566_vm0, %v545_v5  ;;  %1686 = vmatmul.msk.bf16.vlgmr.msra.gmra.mxu1 %vm566_vm0, %v545_v5 }
  0xaa   : > { %v579_v8 = vpop.f32.mrf.mxu0  ;;  %v879_v9 = vpop.f32.mrf.mxu1 }
  0xab   : > { %v580_v10 = vadd.f32 %v1844_v6, %v579_v8  ;;  %v880_v11 = vadd.f32 %v1845_v7, %v879_v9 }
  0xad   : > { %v883_v12 = vmul.f32 0.35355338, %v880_v11  ;;  %590 = vrot.lane.b32.xlu1 %v580_v10, %s2027_s30  ;;  %584 = vrot.lane.b32.xlu0 %v580_v10, %s2028_s16  ;;  %v596_v40 = vrot.slane %v580_v10, 4 }
  0xaf   : > { %888 = vrot.lane.b32.xlu2 %v883_v12, %s2029_s17  ;;  %v897_v24 = vrot.slane %v883_v12, 4 }
  0xb2   : > { %v581_v13 = vpop.f32.mrf.mxu0  ;;  %v881_v14 = vpop.f32.mrf.mxu1 }
  0xb5   : > { %885 = vrot.lane.b32.xlu1 %v883_v12, %s2028_s16  ;;  %587 = vrot.lane.b32.xlu0 %v580_v10, %s2029_s17  ;;  %s1731_s16 = sshll.u32 %s2013_s21, 3  ;;  %s1550_s17 = scalar_lea.sflag [#allocation6], %s531_s23 }
  0xb7   : > { %891 = vrot.lane.b32.xlu2 %v883_v12, %s2027_s30  ;;  %s1667_s30 = sshll.u32 %s531_s23, 3 }
  0xb8   : > { %s533_s20 = scalar_lea.vmem [#allocation9], %s1667_s30  ;;  %s1955_s30 = scalar_lea.hbm %s2515_s15, 16 }
  0xb9   : > { %s1563_s21 = sshll.u32 %s533_s20, 4  ;;  %s1564_s21 = int_to_ptr.vmem [resolvable:$true] %s1563_s21 }
 0x109   : > { %v889_v15 = vpop.permute.xlu2 %888 }
 0x10a   : > { %v894_v18 = vrot.slane %v889_v15, 4  ;;  %v898_v27 = vsel %vm594_vm1, %v889_v15, %v897_v24 }
 0x10b   : > { %v906_v34 = vperm.slane %v898_v27, %v2229_v25 }
 0x10c   : > { %v896_v26 = vsel %vm594_vm1, %v894_v18, %v883_v12 }
 0x10d   : > { %v902_v31 = vperm.slane %v896_v26, %v2229_v25  ;;  %v933_v49 = vrot.slane %v906_v34, 4 }
 0x10f   : > { %v921_v45 = vrot.slane %v902_v31, 4 }
 0x111   : > { %v892_v28 = vpop.permute.xlu2 %891 }
 0x112   : > { %v907_v35 = vrot.slane %v892_v28, 4 }
 0x11f   : > { %v591_v19 = vpop.permute.xlu1 %590  ;;  %v585_v20 = vpop.permute.xlu0 %584 }
 0x120   : > { %v606_v21 = vrot.slane %v591_v19, 4  ;;  %v608_v22 = vrot.slane %v585_v20, 4  ;;  %v1834_v23 = vpack.i.bf16 %v585_v20, %v580_v10 }
 0x122   : > { %1835 = vrot.lane.b32.xlu0 %v1834_v23, %s2031_s25  ;;  %v607_v29 = vsel %vm594_vm1, %v606_v21, %v585_v20  ;;  %v609_v30 = vsel %vm594_vm1, %v591_v19, %v608_v22 }
 0x123   : > { %v613_v36 = vperm.slane %v607_v29, %v2229_v25  ;;  %v617_v37 = vperm.slane %v609_v30, %v2229_v25 }
 0x125   : > { %v618_v57 = vrot.slane %v613_v36, 4  ;;  %v630_v58 = vrot.slane %v617_v37, 4 }
 0x127   : > { %v886_v38 = vpop.permute.xlu1 %885  ;;  %v588_v39 = vpop.permute.xlu0 %587 }
 0x128   : > { %v908_v41 = vsel %vm594_vm1, %v907_v35, %v886_v38  ;;  %v909_v42 = vrot.slane %v886_v38, 4  ;;  %v593_v43 = vrot.slane %v588_v39, 4  ;;  %v1839_v44 = vpack.i.bf16 %v591_v19, %v588_v39 }
 0x129   : > { %v914_v47 = vperm.slane %v908_v41, %v2229_v25  ;;  %v597_v48 = vsel %vm594_vm1, %v588_v39, %v596_v40 }
 0x12a   : > { %v910_v50 = vsel %vm594_vm1, %v892_v28, %v909_v42  ;;  %v595_v51 = vsel %vm594_vm1, %v593_v43, %v580_v10  ;;  %v605_v52 = vperm.slane %v597_v48, %v2229_v25  ;;  %1840 = vrot.lane.b32.xlu1 %v1839_v44, %s2031_s25 }
 0x12b   : > { %v918_v53 = vperm.slane %v910_v50, %v2229_v25  ;;  %v919_v54 = vrot.slane %v914_v47, 4  ;;  %v922_v55 = vsel %vm594_vm1, %v914_v47, %v921_v45  ;;  %v601_v56 = vperm.slane %v595_v51, %v2229_v25 }
 0x12c   : > { %v930_v60 = vperm.slane %v922_v55, %v2240_v46  ;;  %v632_v2 = vrot.slane %v605_v52, 4  ;;  %v631_v6 = vsel %vm594_vm1, %v630_v58, %v605_v52 }
 0x12d   : > { %v920_v59 = vsel %vm594_vm1, %v919_v54, %v902_v31  ;;  %v931_v61 = vrot.slane %v918_v53, 4  ;;  %v934_v62 = vsel %vm594_vm1, %v918_v53, %v933_v49  ;;  %v619_v0 = vsel %vm594_vm1, %v618_v57, %v601_v56 }
 0x12e   : > { %v942_v63 = vperm.slane %v934_v62, %v2240_v46  ;;  %v620_v1 = vrot.slane %v601_v56, 4  ;;  %v926_v5 = vperm.slane %v920_v59, %v2240_v46  ;;  %v945_v7 = vrot.slane %v930_v60, 4 }
 0x12f   : > { %v932_v3 = vsel %vm594_vm1, %v931_v61, %v906_v34  ;;  %v625_v9 = vperm.slane %v619_v0, %v2240_v46  ;;  %v633_v12 = vsel %vm594_vm1, %v617_v37, %v632_v2  ;;  %v637_v14 = vperm.slane %v631_v6, %v2240_v46 }
 0x130   : > { %v621_v8 = vsel %vm594_vm1, %v613_v36, %v620_v1  ;;  %v938_v10 = vperm.slane %v932_v3, %v2240_v46  ;;  %v949_v11 = vrot.slane %v942_v63, 4  ;;  %v943_v15 = vrot.slane %v926_v5, 4 }
 0x131   : > { %v629_v13 = vperm.slane %v621_v8, %v2240_v46  ;;  %v946_v16 = vsel %vm594_vm1, 0.0, %v945_v7  ;;  %v642_v17 = vrot.slane %v625_v9, 4  ;;  %v641_v19 = vperm.slane %v633_v12, %v2240_v46 }
 0x132   : > { %v947_v20 = vrot.slane %v938_v10, 4  ;;  %v950_v21 = vsel %vm594_vm1, 0.0, %v949_v11  ;;  %v951_v22 = vsel %vm594_vm1, %v945_v7, %v926_v5  ;;  %v646_v26 = vrot.slane %v637_v14, 4 }
 0x133   : > { %v644_v18 = vrot.slane %v629_v13, 4  ;;  %v648_v27 = vrot.slane %v641_v19, 4  ;;  %v944_v28 = vsel %vm594_vm1, 0.0, %v943_v15  ;;  %v956_v29 = vrot.slane %v946_v16, 4 }
 0x134   : > { %v967_v32 = vrot.slane %v950_v21, 4  ;;  %v643_v33 = vsel %vm594_vm1, 0.0, %v642_v17  ;;  %v948_v40 = vsel %vm594_vm1, 0.0, %v947_v20  ;;  %v647_v42 = vsel %vm594_vm1, 0.0, %v646_v26 }
 0x135   : > { %v645_v23 = vsel %vm594_vm1, 0.0, %v644_v18  ;;  %v650_v24 = vsel %vm594_vm1, %v644_v18, %v625_v9  ;;  %v649_v34 = vsel %vm594_vm1, 0.0, %v648_v27  ;;  %v661_v35 = vsel %vm594_vm1, %v648_v27, %v637_v14 }
 0x136   : > { %v654_v30 = vperm.slane %v650_v24, %v2229_v25  ;;  %v655_v31 = vrot.slane %v645_v23, 4  ;;  %v665_v38 = vperm.slane %v661_v35, %v2229_v25  ;;  %v666_v39 = vrot.slane %v649_v34, 4 }
 0x137   : > { %v955_v43 = vperm.slane %v951_v22, %v2229_v25  ;;  %v957_v44 = vsel %vm594_vm1, %v956_v29, %v944_v28  ;;  %v962_v48 = vsel %vm594_vm1, %v949_v11, %v938_v10  ;;  %v968_v52 = vsel %vm594_vm1, %v967_v32, %v948_v40 }
 0x138   : > { %v656_v36 = vsel %vm594_vm1, %v655_v31, %v643_v33  ;;  %v674_v37 = vrot.slane %v654_v30, 4  ;;  %v667_v45 = vsel %vm594_vm1, %v666_v39, %v647_v42  ;;  %v686_v47 = vrot.slane %v665_v38, 4 }
 0x139   : > { %v660_v41 = vperm.slane %v656_v36, %v2229_v25  ;;  %v671_v51 = vperm.slane %v667_v45, %v2229_v25  ;;  %v961_v54 = vperm.slane %v957_v44, %v2229_v25  ;;  %v966_v58 = vperm.slane %v962_v48, %v2229_v25 }
 0x13a   : > { %v975_v62 = vrot.slane %v955_v43, 4  ;;  %v972_v0 = vperm.slane %v968_v52, %v2229_v25 }
 0x13b   : > { %v672_v49 = vrot.slane %v660_v41, 4  ;;  %v675_v50 = vsel %vm594_vm1, %v660_v41, %v674_v37  ;;  %v684_v56 = vrot.slane %v671_v51, 4  ;;  %v687_v57 = vsel %vm594_vm1, %v671_v51, %v686_v47 }
 0x13c   : > { %v683_v53 = vperm.slane %v675_v50, %v2240_v46  ;;  %v695_v61 = vperm.slane %v687_v57, %v2240_v46  ;;  %v973_v7 = vrot.slane %v961_v54, 4  ;;  %v987_v11 = vrot.slane %v966_v58, 4 }
 0x13d   : > { %v673_v55 = vsel %vm594_vm1, %v672_v49, %v654_v30  ;;  %v685_v63 = vsel %vm594_vm1, %v684_v56, %v665_v38  ;;  %v976_v14 = vsel %vm594_vm1, %v961_v54, %v975_v62  ;;  %v985_v15 = vrot.slane %v972_v0, 4 }
 0x13e   : > { %v679_v59 = vperm.slane %v673_v55, %v2240_v46  ;;  %v702_v60 = vrot.slane %v683_v53, 4  ;;  %v691_v2 = vperm.slane %v685_v63, %v2240_v46  ;;  %v700_v3 = vrot.slane %v695_v61, 4 }
 0x13f   : > { %v974_v18 = vsel %vm594_vm1, %v973_v7, %v955_v43  ;;  %v984_v19 = vperm.slane %v976_v14, %v2240_v46  ;;  %v988_v20 = vsel %vm594_vm1, %v972_v0, %v987_v11  ;;  %v986_v21 = vsel %vm594_vm1, %v985_v15, %v966_v58 }
 0x140   : > { %v698_v1 = vrot.slane %v679_v59, 4  ;;  %v703_v5 = vsel %vm594_vm1, %v695_v61, %v702_v60  ;;  %v696_v8 = vrot.slane %v691_v2, 4  ;;  %v701_v10 = vsel %vm594_vm1, %v700_v3, %v683_v53 }
 0x141   : > { %v707_v6 = vpack.c.bf16 %v703_v5, %v703_v5  ;;  %v706_v13 = vpack.c.bf16 %v701_v10, %v701_v10  ;;  %v980_v22 = vperm.slane %v974_v18, %v2240_v46  ;;  %v996_v23 = vperm.slane %v988_v20, %v2240_v46 }
 0x142   : > { %v699_v9 = vsel %vm594_vm1, %v691_v2, %v698_v1  ;;  %v697_v16 = vsel %vm594_vm1, %v696_v8, %v679_v59  ;;  %v992_v26 = vperm.slane %v986_v21, %v2240_v46  ;;  %v1003_v27 = vrot.slane %v984_v19, 4 }
 0x143   : > { %v705_v12 = vpack.c.bf16 %v699_v9, %v699_v9  ;;  %712 = vst.msk [vmem:[#allocation2 + $0xc] sm:$0xf] %vm708_vm2, %v707_v6  ;;  %v704_v17 = vpack.c.bf16 %v697_v16, %v697_v16  ;;  %v999_v30 = vrot.slane %v980_v22, 4  ;;  %v1001_v33 = vrot.slane %v996_v23, 4 }
 0x144   : > { %711 = vst.msk [vmem:[#allocation2 + $0x8] sm:$0xf] %vm708_vm2, %v706_v13  ;;  %v997_v36 = vrot.slane %v992_v26, 4  ;;  %v1004_v37 = vsel %vm594_vm1, %v996_v23, %v1003_v27 }
 0x145   : > { %710 = vst.msk [vmem:[#allocation2 + $0x4] sm:$0xf] %vm708_vm2, %v705_v12  ;;  %v1000_v39 = vsel %vm594_vm1, %v992_v26, %v999_v30  ;;  %v1002_v40 = vsel %vm594_vm1, %v1001_v33, %v984_v19  ;;  %v1008_v41 = vpack.c.bf16 %v1004_v37, %v1004_v37 }
 0x146   : > { %709 = vst.msk [vmem:[#allocation2] sm:$0xf] %vm708_vm2, %v704_v17  ;;  %v998_v42 = vsel %vm594_vm1, %v997_v36, %v980_v22  ;;  %v1006_v43 = vpack.c.bf16 %v1000_v39, %v1000_v39  ;;  %v1007_v44 = vpack.c.bf16 %v1002_v40, %v1002_v40 }
 0x147   : > { %v1005_v45 = vpack.c.bf16 %v998_v42, %v998_v42 }
 0x14a   : > { %v1012_v24 = vld [vmem:[#allocation2 + $0xc] sm:$0xf] }
 0x14b   : > { %v1079_v28 = vsel %vm1017_vm3, %v1012_v24, 0  ;;  %v1011_v31 = vld [vmem:[#allocation2 + $0x8] sm:$0xf] }
 0x14c   : > { %1088 = vmatpush.bf16.xpose.msrb.mxu1 %v1079_v28  ;;  %v1010_v29 = vld [vmem:[#allocation2 + $0x4] sm:$0xf]  ;;  %v1060_v34 = vsel %vm1017_vm3, %v1011_v31, 0 }
 0x14d   : > { %v1041_v32 = vsel %vm1017_vm3, %v1010_v29, 0  ;;  %v1009_v35 = vld [vmem:[#allocation2] sm:$0xf]  ;;  %1069 = vmatpush.bf16.xpose.msrb.mxu0 %v1060_v34 }
 0x14e   : > { %1050 = vmatpush.bf16.xpose.msra.mxu3 %v1041_v32  ;;  %v1022_v38 = vsel %vm1017_vm3, %v1009_v35, 0 }
 0x14f   : > { %1031 = vmatpush.bf16.xpose.msra.mxu2 %v1022_v38 }
 0x153   : > { %1690 = vmatmul.msk.bf16.vlgmr.msrb.gmra.mxu1 %vm1017_vm3, %v1008_v41 }
 0x154   : > { %1689 = vmatmul.msk.bf16.vlgmr.msrb.gmra.mxu0 %vm1017_vm3, %v1007_v44 }
 0x155   : > { %1688 = vmatmul.msk.bf16.vlgmr.msra.gmra.mxu3 %vm1017_vm3, %v1006_v43 }
 0x156   : > { %1687 = vmatmul.msk.bf16.vlgmr.msra.gmra.mxu2 %vm1017_vm3, %v1005_v45 }
 0x194   : > { %v1836_v47 = vpop.permute.xlu0 %1835 }
 0x195   : > { %v1838_v48 = vunpack.i.h.bf16 %v1836_v47  ;;  %v1837_v49 = vunpack.i.l.bf16 %v1836_v47 }
 0x197   : > { %v739_v51 = vrot.slane %v1838_v48, 4  ;;  %v727_v52 = vrot.slane %v1837_v49, 4 }
 0x19c   : > { %v1841_v50 = vpop.permute.xlu1 %1840 }
 0x19d   : > { %v1843_v53 = vunpack.i.h.bf16 %v1841_v50  ;;  %v1842_v54 = vunpack.i.l.bf16 %v1841_v50 }
 0x19f   : > { %v737_v55 = vrot.slane %v1843_v53, 4  ;;  %v725_v56 = vrot.slane %v1842_v54, 4  ;;  %v728_v57 = vsel %vm594_vm1, %v1842_v54, %v727_v52  ;;  %v740_v58 = vsel %vm594_vm1, %v1843_v53, %v739_v51 }
 0x1a0   : > { %v736_v59 = vperm.slane %v728_v57, %v2229_v25  ;;  %v748_v60 = vperm.slane %v740_v58, %v2229_v25 }
 0x1a1   : > { %v726_v61 = vsel %vm594_vm1, %v725_v56, %v1837_v49  ;;  %v738_v62 = vsel %vm594_vm1, %v737_v55, %v1838_v48 }
 0x1a2   : > { %v732_v63 = vperm.slane %v726_v61, %v2229_v25  ;;  %v744_v0 = vperm.slane %v738_v62, %v2229_v25  ;;  %v761_v1 = vrot.slane %v748_v60, 4  ;;  %v763_v2 = vrot.slane %v736_v59, 4 }
 0x1a4   : > { %v749_v3 = vrot.slane %v744_v0, 4  ;;  %v751_v5 = vrot.slane %v732_v63, 4  ;;  %v762_v6 = vsel %vm594_vm1, %v761_v1, %v736_v59  ;;  %v764_v7 = vsel %vm594_vm1, %v748_v60, %v763_v2 }
 0x1a5   : > { %v768_v8 = vperm.slane %v762_v6, %v2240_v46  ;;  %v772_v9 = vperm.slane %v764_v7, %v2240_v46 }
 0x1a6   : > { %v750_v10 = vsel %vm594_vm1, %v749_v3, %v732_v63  ;;  %v752_v11 = vsel %vm594_vm1, %v744_v0, %v751_v5 }
 0x1a7   : > { %v756_v12 = vperm.slane %v750_v10, %v2240_v46  ;;  %v760_v13 = vperm.slane %v752_v11, %v2240_v46  ;;  %v777_v14 = vrot.slane %v768_v8, 4  ;;  %v779_v15 = vrot.slane %v772_v9, 4 }
 0x1a9   : > { %v773_v16 = vrot.slane %v756_v12, 4  ;;  %v775_v17 = vrot.slane %v760_v13, 4  ;;  %v780_v18 = vsel %vm594_vm1, 0.0, %v779_v15  ;;  %v792_v19 = vsel %vm594_vm1, %v779_v15, %v768_v8 }
 0x1aa   : > { %v797_v20 = vrot.slane %v780_v18, 4  ;;  %v778_v22 = vsel %vm594_vm1, 0.0, %v777_v14  ;;  %v796_v24 = vperm.slane %v792_v19, %v2229_v25 }
 0x1ab   : > { %v776_v21 = vsel %vm594_vm1, 0.0, %v775_v17  ;;  %v781_v23 = vsel %vm594_vm1, %v775_v17, %v756_v12  ;;  %v774_v29 = vsel %vm594_vm1, 0.0, %v773_v16 }
 0x1ac   : > { %v785_v26 = vperm.slane %v781_v23, %v2229_v25  ;;  %v786_v27 = vrot.slane %v776_v21, 4  ;;  %v798_v28 = vsel %vm594_vm1, %v797_v20, %v778_v22  ;;  %v817_v31 = vrot.slane %v796_v24, 4 }
 0x1ad   : > { %v802_v30 = vperm.slane %v798_v28, %v2229_v25 }
 0x1ae   : > { %v787_v32 = vsel %vm594_vm1, %v786_v27, %v774_v29  ;;  %v805_v33 = vrot.slane %v785_v26, 4 }
 0x1af   : > { %v791_v34 = vperm.slane %v787_v32, %v2229_v25  ;;  %v815_v35 = vrot.slane %v802_v30, 4  ;;  %v818_v36 = vsel %vm594_vm1, %v802_v30, %v817_v31 }
 0x1b0   : > { %v826_v37 = vperm.slane %v818_v36, %v2240_v46 }
 0x1b1   : > { %v803_v38 = vrot.slane %v791_v34, 4  ;;  %v806_v39 = vsel %vm594_vm1, %v791_v34, %v805_v33  ;;  %v816_v40 = vsel %vm594_vm1, %v815_v35, %v796_v24 }
 0x1b2   : > { %v814_v41 = vperm.slane %v806_v39, %v2240_v46  ;;  %v822_v42 = vperm.slane %v816_v40, %v2240_v46  ;;  %v831_v43 = vrot.slane %v826_v37, 4 }
 0x1b3   : > { %v804_v44 = vsel %vm594_vm1, %v803_v38, %v785_v26 }
 0x1b4   : > { %v810_v45 = vperm.slane %v804_v44, %v2240_v46  ;;  %v827_v47 = vrot.slane %v822_v42, 4  ;;  %v832_v48 = vsel %vm594_vm1, %v831_v43, %v814_v41  ;;  %v833_v49 = vrot.slane %v814_v41, 4 }
 0x1b5   : > { %v837_v50 = vpack.c.bf16 %v832_v48, %v832_v48 }
 0x1b6   : > { %v828_v51 = vsel %vm594_vm1, %v827_v47, %v810_v45  ;;  %v829_v52 = vrot.slane %v810_v45, 4  ;;  %v834_v53 = vsel %vm594_vm1, %v826_v37, %v833_v49 }
 0x1b7   : > { %v835_v54 = vpack.c.bf16 %v828_v51, %v828_v51  ;;  %v838_v55 = vpack.c.bf16 %v834_v53, %v834_v53  ;;  %841 = vst.msk [vmem:[#allocation3 + $0x8] sm:$0xf] %vm708_vm2, %v837_v50 }
 0x1b8   : > { %v830_v56 = vsel %vm594_vm1, %v822_v42, %v829_v52 }
 0x1b9   : > { %v836_v57 = vpack.c.bf16 %v830_v56, %v830_v56  ;;  %842 = vst.msk [vmem:[#allocation3 + $0xc] sm:$0xf] %vm708_vm2, %v838_v55 }
 0x1ba   : > { %839 = vst.msk [vmem:[#allocation3] sm:$0xf] %vm708_vm2, %v835_v54 }
 0x1bb   : > { %840 = vst.msk [vmem:[#allocation3 + $0x4] sm:$0xf] %vm708_vm2, %v836_v57 }
 0x1be   : > { %v1015_v58 = vld [vmem:[#allocation3 + $0x8] sm:$0xf] }
 0x1bf   : > { %v1177_v59 = vsel %vm1137_vm4, %v1015_v58, 0 }
 0x1c0   : > { %1186 = vmatpush.bf16.msra.mxu0 %v1177_v59  ;;  %v1016_v60 = vld [vmem:[#allocation3 + $0xc] sm:$0xf] }
 0x1c1   : > { %v1013_v61 = vld [vmem:[#allocation3] sm:$0xf]  ;;  %v1196_v62 = vsel %vm1137_vm4, %v1016_v60, 0 }
 0x1c2   : > { %v1139_v63 = vsel %vm1137_vm4, %v1013_v61, 0  ;;  %1205 = vmatpush.bf16.msra.mxu1 %v1196_v62  ;;  %v1014_v0 = vld [vmem:[#allocation3 + $0x4] sm:$0xf] }
 0x1c3   : > { %1148 = vmatpush.bf16.msrb.mxu2 %v1139_v63  ;;  %v1158_v1 = vsel %vm1137_vm4, %v1014_v0, 0 }
 0x1c4   : > { %1167 = vmatpush.bf16.msrb.mxu3 %v1158_v1 }
 0x1d0   : > { %v1090_v2 = vpop.f32.mrf.mxu1 }
 0x1d1   : > { %v1071_v3 = vpop.f32.mrf.mxu0  ;;  %v1103_v14 = vsel %vm1017_vm3, %v1090_v2, -inf }
 0x1d2   : > { %v1100_v5 = vsel %vm1017_vm3, %v1071_v3, -inf }
 0x1d3   : > { %1101 = vmax.xlane.f32.xlu1 %v1100_v5 }
 0x1d8   : > { %v1052_v6 = vpop.f32.mrf.mxu3  ;;  %v1092_v7 = vpop.f32.mrf.mxu1 }
 0x1d9   : > { %v1097_v8 = vsel %vm1017_vm3, %v1052_v6, -inf  ;;  %v1033_v9 = vpop.f32.mrf.mxu2  ;;  %v1073_v10 = vpop.f32.mrf.mxu0 }
 0x1da   : > { %1098 = vmax.xlane.f32.xlu0 %v1097_v8  ;;  %v1094_v11 = vsel %vm1017_vm3, %v1033_v9, -inf }
 0x1db   : > { %1095 = vmax.xlane.f32.xlu2 %v1094_v11 }
 0x1e0   : > { %v1054_v12 = vpop.f32.mrf.mxu3 }
 0x1e1   : > { %v1035_v13 = vpop.f32.mrf.mxu2 }
 0x1e3   : > { %1104 = vmax.xlane.f32.xlu2 %v1103_v14 }
 0x246   : > { %v1102_v15 = vpop.xlane.xlu1 %1101 }
 0x247   : > { %v1108_v16 = vsub.f32 %v1071_v3, %v1102_v15 }
 0x249   : > { %v1114_v17 = vmul.f32 1.442695, %v1108_v16 }
 0x24b   : > { %1853 = vpow2.f32 %v1114_v17 }
 0x24d   : > { %v1099_v18 = vpop.xlane.xlu0 %1098 }
 0x24e   : > { %v1107_v19 = vsub.f32 %v1052_v6, %v1099_v18  ;;  %v1096_v20 = vpop.xlane.xlu2 %1095 }
 0x24f   : > { %v1106_v21 = vsub.f32 %v1033_v9, %v1096_v20 }
 0x250   : > { %v1112_v22 = vmul.f32 1.442695, %v1107_v19 }
 0x251   : > { %v1110_v23 = vmul.f32 1.442695, %v1106_v21  ;;  %v1854_v24 = vpop.eup %1853 }
 0x252   : > { %1855 = vpow2.f32 %v1112_v22  ;;  %v1132_v26 = vpack.c.bf16 %v1854_v24, %v1854_v24  ;;  %v1124_v27 = vsel %vm1017_vm3, %v1854_v24, 0.0 }
 0x253   : > { %1857 = vpow2.f32 %v1110_v23  ;;  %1125 = vadd.xlane.f32.xlu2 %v1124_v27 }
 0x254   : > { %1693 = vmatmul.msk.bf16.vlgmr.msra.gmra.mxu0 %vm1017_vm3, %v1132_v26 }
 0x256   : > { %v1105_v28 = vpop.xlane.xlu2 %1104 }
 0x257   : > { %v1109_v30 = vsub.f32 %v1090_v2, %v1105_v28 }
 0x258   : > { %v1856_v29 = vpop.eup %1855 }
 0x259   : > { %v1131_v31 = vpack.c.bf16 %v1856_v29, %v1856_v29  ;;  %v1858_v32 = vpop.eup %1857  ;;  %v1116_v33 = vmul.f32 1.442695, %v1109_v30  ;;  %v1121_v34 = vsel %vm1017_vm3, %v1856_v29, 0.0 }
 0x25a   : > { %v1118_v35 = vsel %vm1017_vm3, %v1858_v32, 0.0  ;;  %v1130_v36 = vpack.c.bf16 %v1858_v32, %v1858_v32 }
 0x25b   : > { %1692 = vmatmul.msk.bf16.vlgmr.msrb.gmra.mxu3 %vm1017_vm3, %v1131_v31  ;;  %1859 = vpow2.f32 %v1116_v33  ;;  %1119 = vadd.xlane.f32.xlu0 %v1118_v35 }
 0x25c   : > { %1691 = vmatmul.msk.bf16.vlgmr.msrb.gmra.mxu2 %vm1017_vm3, %v1130_v36  ;;  %1122 = vadd.xlane.f32.xlu2 %v1121_v34 }
 0x261   : > { %v1860_v37 = vpop.eup %1859 }
 0x262   : > { %v1133_v38 = vpack.c.bf16 %v1860_v37, %v1860_v37  ;;  %v1127_v39 = vsel %vm1017_vm3, %v1860_v37, 0.0 }
 0x263   : > { %1128 = vadd.xlane.f32.xlu1 %v1127_v39 }
 0x264   : > { %1694 = vmatmul.msk.bf16.vlgmr.msra.gmra.mxu1 %vm1017_vm3, %v1133_v38 }
 0x2c6   : > { %v1126_v40 = vpop.xlane.xlu2 %1125 }
 0x2c7   : > { %1861 = vrcp.f32 %v1126_v40 }
 0x2cd   : > { %v1862_v47 = vpop.eup %1861 }
 0x2ce   : > { %v1120_v43 = vpop.xlane.xlu0 %1119 }
 0x2cf   : > { %v1123_v42 = vpop.xlane.xlu2 %1122 }
 0x2d0   : > { %1863 = vrcp.f32 %v1123_v42 }
 0x2d1   : > { %v1188_v41 = vpop.f32.mrf.mxu0  ;;  %1865 = vrcp.f32 %v1120_v43 }
 0x2d2   : > { %v1217_v48 = vmul.f32 %v1862_v47, %v1188_v41 }
 0x2d4   : > { %v1219_v54 = vrot.slane %v1217_v48, 4 }
 0x2d6   : > { %v1129_v44 = vpop.xlane.xlu1 %1128  ;;  %v1864_v49 = vpop.eup %1863 }
 0x2d7   : > { %1867 = vrcp.f32 %v1129_v44  ;;  %v1866_v52 = vpop.eup %1865 }
 0x2d9   : > { %v1190_v45 = vpop.f32.mrf.mxu0 }
 0x2dd   : > { %v1868_v57 = vpop.eup %1867 }
 0x2de   : > { %v1169_v50 = vpop.f32.mrf.mxu3 }
 0x2df   : > { %v1216_v51 = vmul.f32 %v1864_v49, %v1169_v50  ;;  %v1150_v53 = vpop.f32.mrf.mxu2 }
 0x2e0   : > { %v1215_v55 = vmul.f32 %v1866_v52, %v1150_v53 }
 0x2e1   : > { %v1233_v56 = vrot.slane %v1216_v51, 4  ;;  %v1207_v58 = vpop.f32.mrf.mxu1 }
 0x2e2   : > { %v1220_v59 = vsel %vm594_vm1, %v1219_v54, %v1215_v55  ;;  %v1221_v60 = vrot.slane %v1215_v55, 4  ;;  %v1218_v61 = vmul.f32 %v1868_v57, %v1207_v58 }
 0x2e3   : > { %v1226_v62 = vperm.slane %v1220_v59, %v2229_v25 }
 0x2e4   : > { %v1222_v63 = vsel %vm594_vm1, %v1217_v48, %v1221_v60  ;;  %v1231_v0 = vrot.slane %v1218_v61, 4  ;;  %v1234_v1 = vsel %vm594_vm1, %v1218_v61, %v1233_v56  ;;  %v1739_v61 = vld [vmem:[#allocation4 + $0x8] sm:$0xff] }
 0x2e5   : > { %v1230_v2 = vperm.slane %v1222_v63, %v2229_v25  ;;  %v1242_v3 = vperm.slane %v1234_v1, %v2229_v25  ;;  %v1245_v7 = vrot.slane %v1226_v62, 4  ;;  %1376 = vmatpush.bf16.msra.mxu2 %v1739_v61 }
 0x2e6   : > { %v1171_v5 = vpop.f32.mrf.mxu3  ;;  %v1232_v6 = vsel %vm594_vm1, %v1231_v0, %v1216_v51 }
 0x2e7   : > { %v1257_v8 = vrot.slane %v1230_v2, 4  ;;  %v1238_v9 = vperm.slane %v1232_v6, %v2229_v25  ;;  %v1255_v10 = vrot.slane %v1242_v3, 4  ;;  %v1152_v11 = vpop.f32.mrf.mxu2  ;;  %v1846_v6 = vld [vmem:[%s2506_s6] ss:$0 sm:$0xff] }
 0x2e9   : > { %v1243_v12 = vrot.slane %v1238_v9, 4  ;;  %v1246_v13 = vsel %vm594_vm1, %v1238_v9, %v1245_v7  ;;  %v1256_v14 = vsel %vm594_vm1, %v1255_v10, %v1230_v2  ;;  %v1258_v15 = vsel %vm594_vm1, %v1242_v3, %v1257_v8  ;;  %v1209_v16 = vpop.f32.mrf.mxu1 }
 0x2ea   : > { %v1254_v17 = vperm.slane %v1246_v13, %v2240_v46  ;;  %v1262_v18 = vperm.slane %v1256_v14, %v2240_v46  ;;  %v1266_v19 = vperm.slane %v1258_v15, %v2240_v46 }
 0x2eb   : > { %v1244_v20 = vsel %vm594_vm1, %v1243_v12, %v1226_v62  ;;  %v1738_v62 = vld [vmem:[#allocation4] sm:$0xff]  ;;  %v2036_v12 = vmov 32.0  }
 0x2ec   : > { %v1250_v21 = vperm.slane %v1244_v20, %v2240_v46  ;;  %v1269_v22 = vrot.slane %v1254_v17, 4  ;;  %v1271_v23 = vrot.slane %v1262_v18, 4  ;;  %v1273_v24 = vrot.slane %v1266_v19, 4  ;;  %1377 = vmatpush.bf16.msra.mxu2 %v1738_v62 }
 0x2ed   : > { %1869 = vrcp.f32 %v2036_v12 }
 0x2ee   : > { %v1267_v26 = vrot.slane %v1250_v21, 4  ;;  %v1270_v27 = vsel %vm594_vm1, 0.0, %v1269_v22  ;;  %v1274_v28 = vsel %vm594_vm1, 0.0, %v1273_v24  ;;  %v1272_v29 = vsel %vm594_vm1, 0.0, %v1271_v23 }
 0x2ef   : > { %v1280_v30 = vrot.slane %v1270_v27, 4  ;;  %v1291_v31 = vrot.slane %v1274_v28, 4  ;;  %v1275_v32 = vsel %vm594_vm1, %v1269_v22, %v1250_v21  ;;  %v1286_v33 = vsel %vm594_vm1, %v1273_v24, %v1262_v18  ;;  %v1740_v24 = vld [vmem:[#allocation7] sm:$0xff] }
 0x2f0   : > { %v1268_v34 = vsel %vm594_vm1, 0.0, %v1267_v26  ;;  %v1279_v35 = vperm.slane %v1275_v32, %v2229_v25  ;;  %v1290_v36 = vperm.slane %v1286_v33, %v2229_v25  ;;  %v1745_v26 = vld [vmem:[%s2509_s9 + $0x18] sm:$0xff] }
 0x2f1   : > { %v1281_v37 = vsel %vm594_vm1, %v1280_v30, %v1268_v34  ;;  %v1292_v38 = vsel %vm594_vm1, %v1291_v31, %v1272_v29  ;;  %1506 = vmatpush.bf16.msrb.mxu0 %v1745_v26  ;;  %v1744_v29 = vld [vmem:[%s2509_s9 + $0x10] sm:$0xff]  ;;  %v1743_v31 = vld [vmem:[%s2509_s9 + $0x8] sm:$0xff] }
 0x2f2   : > { %v1285_v39 = vperm.slane %v1281_v37, %v2229_v25  ;;  %v1296_v40 = vperm.slane %v1292_v38, %v2229_v25  ;;  %v1299_v41 = vrot.slane %v1279_v35, 4  ;;  %v1311_v42 = vrot.slane %v1290_v36, 4  ;;  %v1847_v38 = vld [vmem:[%s2511_s11] ss:$0 sm:$0xff] }
 0x2f3   : > { %v1870_v13 = vpop.eup %1869 }
 0x2f4   : > { %v1300_v43 = vsel %vm594_vm1, %v1285_v39, %v1299_v41  ;;  %v1312_v44 = vsel %vm594_vm1, %v1296_v40, %v1311_v42  ;;  %v1297_v45 = vrot.slane %v1285_v39, 4  ;;  %v1309_v47 = vrot.slane %v1296_v40, 4  ;;  %v1848_v40 = vld [vmem:[%s2512_s12] ss:$0 sm:$0xff] }
 0x2f5   : > { %v1308_v48 = vperm.slane %v1300_v43, %v2240_v46  ;;  %v1320_v49 = vperm.slane %v1312_v44, %v2240_v46  ;;  %v1390_v14 = vmul.f32 32.0, %v1870_v13  ;;  %vm1394_vm7 = vweird.f32 %v1870_v13  ;;  %1507 = vmatpush.bf16.msrb.mxu0 %v1744_v29 }
 0x2f6   : > { %v1298_v50 = vsel %vm594_vm1, %v1297_v45, %v1279_v35  ;;  %v1310_v51 = vsel %vm594_vm1, %v1309_v47, %v1290_v36  ;;  %v1742_v45 = vld [vmem:[%s2509_s9] sm:$0xff] }
 0x2f7   : > { %v1327_v52 = vrot.slane %v1308_v48, 4  ;;  %v1325_v53 = vrot.slane %v1320_v49, 4  ;;  %v1304_v25 = vperm.slane %v1298_v50, %v2240_v46  ;;  %v1316_v54 = vperm.slane %v1310_v51, %v2240_v46  ;;  %v1849_v47 = vld [vmem:[%s2508_s8] ss:$0 sm:$0xff] }
 0x2f8   : > { %v1391_v15 = vsub.f32 1.0, %v1390_v14 }
 0x2f9   : > { %v1328_v55 = vsel %vm594_vm1, %v1320_v49, %v1327_v52  ;;  %v1326_v56 = vsel %vm594_vm1, %v1325_v53, %v1308_v48  ;;  %v1321_v57 = vrot.slane %v1316_v54, 4  ;;  %v1323_v58 = vrot.slane %v1304_v25, 4  ;;  %1508 = vmatpush.bf16.msrb.mxu0 %v1743_v31  ;;  %v1850_v53 = vld [vmem:[%s2510_s10] ss:$0 sm:$0xff] }
 0x2fa   : > { %1338 = vrot.lane.b32.xlu2 %v1328_v55, %s2033_s29  ;;  %1334 = vrot.lane.b32.xlu1 %v1326_v56, %s2034_s27  ;;  %v1392_v16 = vmul.f32 %v1870_v13, %v1391_v15 }
 0x2fb   : > { %v1324_v59 = vsel %vm594_vm1, %v1316_v54, %v1323_v58  ;;  %v1322_v60 = vsel %vm594_vm1, %v1321_v57, %v1304_v25 }
 0x2fc   : > { %1330 = vrot.lane.b32.xlu0 %v1324_v59, %s2035_s18  ;;  %v1393_v17 = vadd.f32 %v1870_v13, %v1392_v16  ;;  %s1561_s18 = scalar_lea.hbm %s2515_s15, %s1731_s16 }
 0x2fd   : > { %1509 = vmatpush.bf16.msrb.mxu0 %v1742_v45  ;;  %s1565_s22 = sshll.u32 %s1561_s18, 4  ;;  %s1566_s22 = int_to_ptr.hbm [resolvable:$true] %s1565_s22 }
 0x2fe   : > { %v1395_v18 = vsel %vm1394_vm7, %v1870_v13, %v1393_v17  ;;  %s1949_s25 = sshra.s32 %s1566_s22, 4  ;;  %s1950_s25 = int_to_ptr.hbm [resolvable:$true] %s1949_s25 }
 0x2ff   : > { %s1951_s16 = scalar_lea.hbm %s1950_s25, 8  ;;  %p1956_p5 = scmp.lt.s32.totalorder %s1950_s25, %s2515_s15 }
 0x300   : > { %p1952_p1 = scmp.ne.s32.totalorder %s1950_s25, %s1951_s16  ;;  %p1957_p6 = scmp.lt.s32.totalorder %s1955_s30, %s1951_s16 }
 0x302   : > { %p1953_p2 = pnand %p1952_p1, %p2157_p4  ;;  %p1958_p7 = por %p1957_p6, %p1956_p5 }
 0x304   : > { %p1954_p3 = pneg %p1953_p2 }
 0x306   : > { %p1959_p9 = pnand %p1958_p7, %p1954_p3 }
 0x354   : > { %v1339_v1 = vpop.permute.xlu2 %1338 }
 0x36c   : > { %v1335_v63 = vpop.permute.xlu1 %1334 }
 0x36e   : > { %v1331_v46 = vpop.permute.xlu0 %1330 }
 0x36f   : > { %v1341_v0 = vsel %vm1017_vm3, %v1322_v60, %v1331_v46 }
 0x370   : > { %v1343_v2 = vsel %vm1342_vm5, %v1341_v0, %v1335_v63 }
 0x371   : > { %v1345_v3 = vsel %vm1344_vm6, %v1343_v2, %v1339_v1 }
 0x372   : > { %v1346_v5 = vpack.c.bf16 %v1345_v3, %v1345_v3 }
 0x374   : > { %1703 = vmatmul.msk.bf16.vlgmr.msra.gmra.mxu2 %vm566_vm0, %v1346_v5 }
 0x3f7   : > { %v1379_v7 = vpop.f32.mrf.mxu2 }
 0x3f8   : > { %v1380_v8 = vadd.f32 %v1846_v6, %v1379_v7 }
 0x3fa   : > { %v1383_v9 = vadd.f32 %v1380_v8, %v2217_v4  ;;  %v1741_v4 = vld [vmem:[#allocation7 + $0x8] sm:$0xff]  ;;  %v1851_v8 = vld [vmem:[%s2513_s13] ss:$0 sm:$0xff] }
 0x3fb   : > { %1453 = vmatpush.bf16.msra.mxu3 %v1741_v4 }
 0x3fc   : > { %v1386_v10 = vsel %vm566_vm0, %v1383_v9, 0.0 }
 0x3fd   : > { %1387 = vadd.xlane.f32.xlu0 %v1386_v10 }
 0x3ff   : > { %v1381_v11 = vpop.f32.mrf.mxu2  ;;  %1454 = vmatpush.bf16.msra.mxu3 %v1740_v24 }
 0x400   : > { %v1852_v11 = vld [vmem:[%s2535_s14] ss:$0 sm:$0xff] }
 0x470   : > { %v1388_v19 = vpop.xlane.xlu0 %1387 }
 0x471   : > { %v1396_v20 = vmul.f32 %v1395_v18, %v1388_v19 }
 0x473   : > { %v1397_v21 = vsub.f32 %v1383_v9, %v1396_v20 }
 0x475   : > { %v1398_v22 = vmul.f32 %v1397_v21, %v1397_v21 }
 0x477   : > { %v1399_v23 = vsel %vm566_vm0, %v1398_v22, 0.0 }
 0x478   : > { %1400 = vadd.xlane.f32.xlu1 %v1399_v23 }
 0x4eb   : > { %v1401_v27 = vpop.xlane.xlu1 %1400 }
 0x4ec   : > { %v1402_v28 = vmul.f32 %v1401_v27, %v1395_v18 }
 0x4ee   : > { %v1403_v30 = vadd.f32 1e-05, %v1402_v28 }
 0x4f0   : > { %1871 = vrsqrt.f32 %v1403_v30  ;;  %vm1410_vm9 = vweird.f32 %v1403_v30 }
 0x4f6   : > { %v1872_v32 = vpop.eup %1871 }
 0x4f7   : > { %v1405_v33 = vmul.f32 %v1872_v32, %v1403_v30  ;;  %vm1411_vm8 = vweird.f32 %v1872_v32 }
 0x4f8   : > { %vm1412_vm10 = vmor %vm1410_vm9, %vm1411_vm8 }
 0x4f9   : > { %v1406_v34 = vmul.f32 %v1872_v32, %v1405_v33 }
 0x4fb   : > { %v1407_v35 = vmul.f32 0.5, %v1406_v34 }
 0x4fd   : > { %v1408_v36 = vsub.f32 1.5, %v1407_v35 }
 0x4ff   : > { %v1409_v37 = vmul.f32 %v1872_v32, %v1408_v36 }
 0x501   : > { %v1413_v39 = vsel %vm1412_vm10, %v1872_v32, %v1409_v37 }
 0x502   : > { %v1414_v41 = vmul.f32 %v1413_v39, %v1397_v21 }
 0x504   : > { %v1418_v42 = vmul.f32 %v1847_v38, %v1414_v41 }
 0x506   : > { %v1422_v43 = vadd.f32 %v1848_v40, %v1418_v42 }
 0x508   : > { %v1423_v44 = vpack.c.bf16 %v1422_v43, %v1422_v43 }
 0x50a   : > { %1712 = vmatmul.msk.bf16.vlgmr.msra.gmra.mxu3 %vm566_vm0, %v1423_v44 }
 0x58d   : > { %v1456_v48 = vpop.f32.mrf.mxu3 }
 0x58e   : > { %v1457_v49 = vadd.f32 %v1849_v47, %v1456_v48 }
 0x590   : > { %v1460_v50 = vmax.f32 %v1457_v49, 0.0 }
 0x592   : > { %v1461_v51 = vpack.c.bf16 %v1460_v50, %v1460_v50 }
 0x594   : > { %1729 = vmatmul.msk.bf16.vlgmr.msrb.gmra.mxu0 %vm1498_vm11, %v1461_v51 }
 0x595   : > { %v1458_v52 = vpop.f32.mrf.mxu3 }
 0x611   : > { %v1511_v25 = vpop.f32.mrf.mxu0 }
 0x612   : > { %v1512_v54 = vadd.f32 %v1850_v53, %v1511_v25 }
 0x614   : > { %v1515_v55 = vadd.f32 %v1512_v54, %v1422_v43 }
 0x616   : > { %v1518_v56 = vsel %vm566_vm0, %v1515_v55, 0.0 }
 0x617   : > { %1519 = vadd.xlane.f32.xlu2 %v1518_v56 }
 0x619   : > { %v1513_v57 = vpop.f32.mrf.mxu0 }
 0x68a   : > { %v1520_v58 = vpop.xlane.xlu2 %1519 }
 0x68b   : > { %v1521_v59 = vmul.f32 %v1520_v58, %v1395_v18 }
 0x68d   : > { %v1522_v60 = vsub.f32 %v1515_v55, %v1521_v59 }
 0x68f   : > { %v1523_v61 = vmul.f32 %v1522_v60, %v1522_v60 }
 0x691   : > { %v1524_v62 = vsel %vm566_vm0, %v1523_v61, 0.0 }
 0x692   : > { %1525 = vadd.xlane.f32.xlu0 %v1524_v62 }
 0x705   : > { %v1526_v46 = vpop.xlane.xlu0 %1525 }
 0x706   : > { %v1527_v63 = vmul.f32 %v1526_v46, %v1395_v18 }
 0x708   : > { %v1528_v0 = vadd.f32 1e-05, %v1527_v63 }
 0x70a   : > { %1873 = vrsqrt.f32 %v1528_v0  ;;  %vm1535_vm13 = vweird.f32 %v1528_v0 }
 0x710   : > { %v1874_v1 = vpop.eup %1873 }
 0x711   : > { %v1530_v2 = vmul.f32 %v1874_v1, %v1528_v0  ;;  %vm1536_vm12 = vweird.f32 %v1874_v1 }
 0x712   : > { %vm1537_vm14 = vmor %vm1535_vm13, %vm1536_vm12 }
 0x713   : > { %v1531_v3 = vmul.f32 %v1874_v1, %v1530_v2 }
 0x715   : > { %v1532_v5 = vmul.f32 0.5, %v1531_v3 }
 0x717   : > { %v1533_v6 = vsub.f32 1.5, %v1532_v5 }
 0x719   : > { %v1534_v7 = vmul.f32 %v1874_v1, %v1533_v6 }
 0x71b   : > { %v1538_v9 = vsel %vm1537_vm14, %v1874_v1, %v1534_v7 }
 0x71c   : > { %v1539_v10 = vmul.f32 %v1538_v9, %v1522_v60 }
 0x71e   : > { %v1543_v12 = vmul.f32 %v1851_v8, %v1539_v10 }
 0x720   : > { %v1547_v13 = vadd.f32 %v1852_v11, %v1543_v12 }
 0x722   : > { %1548 = vst.msk [vmem:[%s533_s20] sm:$0xff] %vm566_vm0, %v1547_v13 }
 0x723   : > { %1962 = shalt.err (!%p1959_p9)
}
 0x724   : > { %1754 = dma.vmem_to_hbm [thread:$0]  (%p2157_p4), %s1564_s21, 128, %s1566_s22, %s1550_s17  }
 0x725 PF: > { %s2536_s23 = sld [smem:[#allocation16_spill]] }
 0x726   : > { %s2537_s26 = sld [smem:[#allocation13_spill]] }
 0x72b   : > { %p1771_p10 = scmp.ge.s32.totalorder %s2536_s23, 2 }
 0x72c   : > { %s1577_s20 = sand.u32 1, %s2537_s26  }
 0x72d   : > { %p1764_p11 = pnand %p1771_p10, %p2164_p8  ;;  %s1578_s29 = scalar_lea.sflag [#allocation6], %s1577_s20 }
 0x72f   : > { %p1765_p12 = pneg %p1764_p11 }
 0x731   : > { %1996 = dma.done.wait (%p1765_p12), %s1578_s29, 128  }
 0x732   : > { %1998 = vsyncadd (%p1765_p12), %s1578_s29, 4294967168  ;;  %s30_s23 = sadd.s32 1, %s2536_s23   ;;  %s2539_s25 = sld [smem:[#allocation14_spill]] }
 0x733   : > { %p27_p13 = scmp.ge.s32.totalorder %s30_s23, 4   ;;  %s2540_s20 = sld [smem:[#allocation19_spill]] }
 0x734   : > { %s2541_s21 = sld [smem:[#allocation15_spill]]  ;;  %s2543_s18 = smov %s2005_s19 }
 0x735   : > { %s2542_s22 = sld [smem:[#allocation17_spill]]  ;;  %29 = sbr.rel (!%p27_p13) target bundleno = 8 (0x8), region = 129 }
 0x738   : > { %s2544_s19 = smov %s2539_s25 }
 0x73a   :  { %1584 = vsyncpa [#allocation5], 1 }
 0x73b   :  { %1586 = vsyncpa [#allocation5 + $0x1], 1 }
 0x73c   :  { %1587 = vsyncpa [#allocation8], 1 }
 0x73d   :  { %1588 = vsyncpa [#allocation6], 1 }
 0x73e   :  { %1590 = vsyncpa [#allocation6 + $0x1], 1 }

</bundles_post_ra>
